<compile_context>
chip_gen: v6e
topology: v6e:2x2x1
jax: 0.10.0
libtpu: 0.0.40
codegen_flags: <defaults>
</compile_context>

<pallas_src>
import functools

import jax
import jax.numpy as jnp
from jax.experimental import pallas as pl
from jax.experimental.pallas import tpu as pltpu


# ----------------------------- Pallas kernel -------------------------------

def _conv_bn_kernel(w_ref, b_ref, p_ref, o_ref, *, relu):
    # w: (Cout, K) bf16   p: (K, tn) bf16   b: (Cout, 1) f32   o: (Cout, tn)
    y = jnp.dot(w_ref[...], p_ref[...], preferred_element_type=jnp.float32)
    y = y + b_ref[...]
    if relu:
        y = jnp.maximum(y, 0.0)
    o_ref[...] = y.astype(o_ref.dtype)


# ----------------------------- Pallas wrapper -------------------------------

def _pick_tile(nm):
    """Lane tile: lane-dense, keep >=2 grid steps when possible (v7x: 2 TCs),
    cap at 1024 lanes so double-buffered tiles stay far below VMEM limits."""
    if nm <= 256 or nm % 256 != 0:
        return nm                      # full-extent block (tiny inner layers)
    tn = 256
    while tn * 2 <= 1024 and nm % (tn * 2) == 0 and nm // (tn * 2) >= 2:
        tn *= 2
    return tn


def conv_matmul(pT, w_mat, bias, relu, out_dtype=jnp.bfloat16):
    """out = act(w_mat @ pT + bias) with the large N*M axis on lanes.

    pT: (K, NM) bf16, w_mat: (Cout, K) bf16 (BN scale pre-folded),
    bias: (Cout, 1) f32.  Returns (Cout, NM) in out_dtype.
    """
    K, NM = pT.shape
    Cout = w_mat.shape[0]
    tn = _pick_tile(NM)
    grid = (NM // tn,)

    bytes_accessed = int(pT.size * pT.dtype.itemsize + w_mat.size * 2
                         + bias.size * 4 + Cout * NM * jnp.dtype(out_dtype).itemsize)
    cost = pl.CostEstimate(flops=int(2 * NM * K * Cout), transcendentals=0,
                           bytes_accessed=bytes_accessed)

    return pl.pallas_call(
        functools.partial(_conv_bn_kernel, relu=relu),
        out_shape=jax.ShapeDtypeStruct((Cout, NM), out_dtype),
        grid=grid,
        in_specs=[
            pl.BlockSpec((Cout, K), lambda m: (0, 0)),   # resident folded weights
            pl.BlockSpec((Cout, 1), lambda m: (0, 0)),   # resident bias
            pl.BlockSpec((K, tn), lambda m: (0, m)),     # patch tile (lane-dense)
        ],
        out_specs=pl.BlockSpec((Cout, tn), lambda m: (0, m)),
        compiler_params=pltpu.CompilerParams(dimension_semantics=("parallel",)),
        cost_estimate=cost,
    )(w_mat, bias, pT)


# ----------------------------- JAX glue -------------------------------------

def fold_bn(bn, eps=1e-5):
    scale = bn["gamma"] / jnp.sqrt(bn["var"] + eps)
    bias = bn["beta"] - bn["mean"] * scale
    return scale, bias


def im2col_T(x, k, stride, pad):
    """x: (C, N, D, H, W) -> (C*k^3, N*Do*Ho*Wo); K order = (c, kd, kh, kw),
    lane order = (n, d, h, w).  Channel-major layout -> no transposes needed."""
    C, N, D, H, W = x.shape
    xp = jnp.pad(x, ((0, 0), (0, 0), (pad, pad), (pad, pad), (pad, pad)))
    Do = (D + 2 * pad - k) // stride + 1
    Ho = (H + 2 * pad - k) // stride + 1
    Wo = (W + 2 * pad - k) // stride + 1
    cols = []
    for kd in range(k):
        for kh in range(k):
            for kw in range(k):
                sl = xp[:, :,
                        kd:kd + (Do - 1) * stride + 1:stride,
                        kh:kh + (Ho - 1) * stride + 1:stride,
                        kw:kw + (Wo - 1) * stride + 1:stride]
                cols.append(sl.reshape(C, 1, N * Do * Ho * Wo))
    pT = jnp.concatenate(cols, axis=1).reshape(C * k ** 3, N * Do * Ho * Wo)
    return pT.astype(jnp.bfloat16), (Do, Ho, Wo)


def convbn3d(x, p, stride, pad, relu):
    """Conv3d(bias=False) + folded BatchNorm3d (+ ReLU).  x: (Cin, N, D, H, W)."""
    w = p["w"]                                              # (Cout, Cin, k, k, k)
    Cout, Cin, k = w.shape[0], w.shape[1], w.shape[2]
    N = x.shape[1]
    pT, (Do, Ho, Wo) = im2col_T(x, k, stride, pad)
    scale, bias = fold_bn(p["bn"])
    w_mat = (w.reshape(Cout, Cin * k ** 3) * scale[:, None]).astype(jnp.bfloat16)
    out = conv_matmul(pT, w_mat, bias.reshape(Cout, 1).astype(jnp.float32), relu)
    return out.reshape(Cout, N, Do, Ho, Wo)


def _axis_k(parity_bit, offset):
    """Sub-pixel decomposition of ConvTranspose(k=3, s=2, p=1, out_pad=1) per axis:
    output j=2m+b uses x[m+o] * w[k] with (b,o)->k mapping below (None = no tap)."""
    if parity_bit == 0:
        return 1 if offset == 0 else None
    return 2 if offset == 0 else 0


def deconv_redir_fused(x, skip, p_deconv, p_redir):
    """ConvTranspose3d(3, stride=2, pad=1, out_pad=1) + BN  (+)  1x1 redir conv + BN,
    all in ONE Pallas matmul via stride-parity decomposition and K-concatenation.

    x:    (Cin,  N, D,  H,  W)   (deconv input)
    skip: (Cout, N, 2D, 2H, 2W)  (redir input; same channel count as deconv output)
    returns pre-gate sum, shape (Cout, N, 2D, 2H, 2W), bf16."""
    wt = p_deconv["w"]                                      # (Cin, Cout, 3, 3, 3)
    Cin, N, D, H, W = x.shape
    Cout = wt.shape[1]
    NM = N * D * H * W

    # --- 2x2x2 im2col of the UN-dilated input (pad high by 1 on each axis) -----
    xp = jnp.pad(x, ((0, 0), (0, 0), (0, 1), (0, 1), (0, 1)))
    cols = []
    for od in range(2):
        for oh in range(2):
            for ow in range(2):
                cols.append(xp[:, :, od:od + D, oh:oh + H, ow:ow + W]
                            .reshape(Cin, 1, NM))
    pT = jnp.concatenate(cols, axis=1).reshape(Cin * 8, NM)

    # --- parity (space-to-depth) rearrangement of the skip activation ----------
    scols = []
    for pd in range(2):
        for ph in range(2):
            for pw in range(2):
                scols.append(skip[:, :, pd::2, ph::2, pw::2].reshape(1, Cout, NM))
    skip_par = jnp.concatenate(scols, axis=0).reshape(8 * Cout, NM)

    rhs = jnp.concatenate([pT, skip_par], axis=0).astype(jnp.bfloat16)  # (Ktot, NM)

    # --- combined folded weight: [deconv taps | block-diag redir] --------------
    scale_d, bias_d = fold_bn(p_deconv["bn"])
    scale_r, bias_r = fold_bn(p_redir["bn"])
    w_redir = (p_redir["w"].reshape(Cout, Cout) * scale_r[:, None])     # (Cout, Cout)
    K_deconv = Cin * 8
    K_total = K_deconv + 8 * Cout

    w_rows = []
    for pd in range(2):
        for ph in range(2):
            for pw in range(2):
                pidx = pd * 4 + ph * 2 + pw
                taps = []
                for od in range(2):
                    kd = _axis_k(pd, od)
                    for oh in range(2):
                        kh = _axis_k(ph, oh)
                        for ow in range(2):
                            kw = _axis_k(pw, ow)
                            if kd is None or kh is None or kw is None:
                                taps.append(jnp.zeros((Cout, Cin), wt.dtype))
                            else:
                                taps.append(wt[:, :, kd, kh, kw].T)     # (Cout, Cin)
                w_p = jnp.stack(taps, axis=-1).reshape(Cout, Cin * 8)   # K=(c,od,oh,ow)
                w_p = w_p * scale_d[:, None]
                row = jnp.zeros((Cout, K_total), jnp.float32)
                row = row.at[:, :K_deconv].set(w_p)
                row = row.at[:, K_deconv + pidx * Cout:
                             K_deconv + (pidx + 1) * Cout].set(w_redir)
                w_rows.append(row)
    W_all = jnp.concatenate(w_rows, axis=0).astype(jnp.bfloat16)        # (8*Cout, Ktot)
    bias_all = jnp.tile((bias_d + bias_r).reshape(Cout, 1),
                        (8, 1)).astype(jnp.float32)                     # (8*Cout, 1)

    out = conv_matmul(rhs, W_all, bias_all, relu=False)                 # (8*Cout, NM)

    # interleave the 8 parity outputs back onto the 2x upsampled grid
    out = (out.reshape(2, 2, 2, Cout, N, D, H, W)
              .transpose(3, 4, 5, 0, 6, 1, 7, 2)
              .reshape(Cout, N, 2 * D, 2 * H, 2 * W))
    return out


def coord_atten_gate(y, p, out_dtype):
    """relu(coordinate_attention(y) * y) with y channel-major (C, N, D, H, W).

    Tiny pooled tensors + broadcast product; the full-size attention tensor is never
    built by hand -- XLA fuses the broadcast multiply with the relu (per review, a
    dedicated pallas_call here costs more than it saves at these sizes).
    TODO(synk): coordinate_attention_mamba source not provided; linear variant used."""
    yf = y.astype(jnp.float32)
    C, N, D, H, W = yf.shape
    x_d = yf.mean(axis=(3, 4))                              # (C, N, D)
    x_h = yf.mean(axis=(2, 4))                              # (C, N, H)
    x_w = yf.mean(axis=(2, 3))                              # (C, N, W)
    cat = jnp.concatenate([x_d, x_h, x_w], axis=-1)         # (C, N, D+H+W)
    mid = jnp.einsum("mc,cnl->mnl", p["w1"], cat)           # (Cm, N, L)
    s1, b1 = fold_bn(p["bn1"])
    mid = jax.nn.relu(mid * s1[:, None, None] + b1[:, None, None])
    a_d = jax.nn.sigmoid(jnp.einsum("cm,mnl->cnl", p["wd"], mid[:, :, :D]))
    a_h = jax.nn.sigmoid(jnp.einsum("cm,mnl->cnl", p["wh"], mid[:, :, D:D + H]))
    a_w = jax.nn.sigmoid(jnp.einsum("cm,mnl->cnl", p["ww"], mid[:, :, D + H:]))
    gated = jax.nn.relu(yf * a_d[:, :, :, None, None]
                        * a_h[:, :, None, :, None]
                        * a_w[:, :, None, None, :])
    return gated.astype(out_dtype)


def mcahg_forward(x, params):
    # channel-major layout throughout: (C, N, D, H, W)
    xc = jnp.transpose(x, (1, 0, 2, 3, 4)).astype(jnp.bfloat16)

    conv1 = convbn3d(xc, params["conv1"], stride=2, pad=1, relu=True)
    conv2 = convbn3d(conv1, params["conv2"], stride=1, pad=1, relu=True)
    conv3 = convbn3d(conv2, params["conv3"], stride=2, pad=1, relu=True)
    conv4 = convbn3d(conv3, params["conv4"], stride=1, pad=1, relu=True)

    # conv5_4 + redir2 fused in one matmul (parity deconv + block-diagonal 1x1)
    y5 = deconv_redir_fused(conv4, conv2, params["conv5"], params["redir2"])
    conv5 = coord_atten_gate(y5, params["ca5"], jnp.bfloat16)

    # conv6_5 + redir1 fused likewise
    y6 = deconv_redir_fused(conv5, xc, params["conv6"], params["redir1"])
    conv6 = coord_atten_gate(y6, params["ca6"], jnp.float32)

    return jnp.transpose(conv6, (1, 0, 2, 3, 4))            # back to (N, C, D, H, W)


# ----------------------------- parameter init -------------------------------

def _bn_params(key, c):
    k1, k2, k3, k4 = jax.random.split(key, 4)
    return dict(
        gamma=1.0 + 0.1 * jax.random.normal(k1, (c,), jnp.float32),
        beta=0.1 * jax.random.normal(k2, (c,), jnp.float32),
        mean=0.1 * jax.random.normal(k3, (c,), jnp.float32),
        var=1.0 + 0.1 * jax.random.uniform(k4, (c,), jnp.float32),
    )


def _conv_params(key, cout, cin, k):
    kw, kb = jax.random.split(key)
    fan_in = cin * k ** 3
    w = jax.random.normal(kw, (cout, cin, k, k, k), jnp.float32) / jnp.sqrt(fan_in)
    return dict(w=w, bn=_bn_params(kb, cout))


def _convT_params(key, cin, cout, k):
    kw, kb = jax.random.split(key)
    fan_in = cin * k ** 3
    w = jax.random.normal(kw, (cin, cout, k, k, k), jnp.float32) / jnp.sqrt(fan_in)
    return dict(w=w, bn=_bn_params(kb, cout))


def _ca_params(key, c):
    cm = max(c // 2, 4)
    k1, k2, k3, k4, k5 = jax.random.split(key, 5)
    return dict(
        w1=jax.random.normal(k1, (cm, c), jnp.float32) / jnp.sqrt(c),
        bn1=_bn_params(k5, cm),
        wd=jax.random.normal(k2, (c, cm), jnp.float32) / jnp.sqrt(cm),
        wh=jax.random.normal(k3, (c, cm), jnp.float32) / jnp.sqrt(cm),
        ww=jax.random.normal(k4, (c, cm), jnp.float32) / jnp.sqrt(cm),
    )


def init_params(key, C):
    keys = jax.random.split(key, 10)
    return dict(
        conv1=_conv_params(keys[0], 2 * C, C, 3),
        conv2=_conv_params(keys[1], 2 * C, 2 * C, 3),
        conv3=_conv_params(keys[2], 4 * C, 2 * C, 3),
        conv4=_conv_params(keys[3], 4 * C, 4 * C, 3),
        conv5=_convT_params(keys[4], 4 * C, 2 * C, 3),
        conv6=_convT_params(keys[5], 2 * C, C, 3),
        redir1=_conv_params(keys[6], C, C, 1),
        redir2=_conv_params(keys[7], 2 * C, 2 * C, 1),
        ca5=_ca_params(keys[8], 2 * C),
        ca6=_ca_params(keys[9], C),
    )


# ----------------------------- main ------------------------------------------

if __name__ == "__main__":
    key = jax.random.PRNGKey(0)
    kx, kp = jax.random.split(key)
    # small cost-volume shapes: N=2, C=4 (in_channels), D=8, H=16, W=16 (all div by 4)
    N, C, D, H, W = 2, 4, 8, 16, 16
    x = jax.random.normal(kx, (N, C, D, H, W), jnp.float32)
    params = init_params(kp, C)

    out = jax.jit(mcahg_forward)(x, params)
    out = jax.block_until_ready(out)
    assert out.shape == (N, C, D, H, W), out.shape
    assert jnp.all(jnp.isfinite(out))
    print("KERNEL_OK")
</pallas_src>

<mosaic_0001>
module attributes {stable_mosaic.version = 11 : i64} {
  func.func @_conv_bn_kernel(%arg0: i32, %arg1: memref<8x108xbf16, #tpu.memory_space<vmem>>, %arg2: memref<8x1xf32, #tpu.memory_space<vmem>>, %arg3: memref<108x256xbf16, #tpu.memory_space<vmem>>, %arg4: memref<8x256xbf16, #tpu.memory_space<vmem>>) attributes {dimension_semantics = [#tpu.dimension_semantics<parallel>], iteration_bounds = array<i64: 2>, scalar_prefetch = 0 : i64, scratch_operands = 0 : i64, tpu.core_type = #tpu.core_type<tc>, window_params = [{pipeline_mode = #tpu.pipeline_mode<synchronous>, transform_indices = @transform_0, window_bounds = array<i64: 8, 108>}, {pipeline_mode = #tpu.pipeline_mode<synchronous>, transform_indices = @transform_1, window_bounds = array<i64: 8, 1>}, {transform_indices = @transform_2, window_bounds = array<i64: 108, 256>}, {transform_indices = @transform_3, window_bounds = array<i64: 8, 256>}]} {
    %c0 = arith.constant 0 : index
    %c0_0 = arith.constant 0 : index
    %0 = vector.load %arg1[%c0, %c0_0] : memref<8x108xbf16, #tpu.memory_space<vmem>>, vector<8x108xbf16>
    %c0_1 = arith.constant 0 : index
    %c0_2 = arith.constant 0 : index
    %1 = vector.load %arg3[%c0_1, %c0_2] : memref<108x256xbf16, #tpu.memory_space<vmem>>, vector<108x256xbf16>
    %cst = arith.constant dense<0.000000e+00> : vector<8x256xf32>
    %2 = tpu.matmul %0, %1, %cst {dimension_numbers = #tpu.dot_dimension_numbers<[1], [0], [0], [1], [0, 0, 1, 1], [], []>} : vector<8x108xbf16>, vector<108x256xbf16>, vector<8x256xf32> -> vector<8x256xf32>
    %c0_3 = arith.constant 0 : index
    %c0_4 = arith.constant 0 : index
    %3 = vector.load %arg2[%c0_3, %c0_4] : memref<8x1xf32, #tpu.memory_space<vmem>>, vector<8x1xf32>
    %4 = vector.broadcast %3 : vector<8x1xf32> to vector<8x256xf32>
    %5 = arith.addf %2, %4 : vector<8x256xf32>
    %cst_5 = arith.constant 0.000000e+00 : f32
    %6 = vector.broadcast %cst_5 : f32 to vector<8x256xf32>
    %7 = arith.maximumf %5, %6 : vector<8x256xf32>
    %8 = arith.truncf %7 : vector<8x256xf32> to vector<8x256xbf16>
    %c0_6 = arith.constant 0 : index
    %c0_7 = arith.constant 0 : index
    %9 = vector.load %arg4[%c0_6, %c0_7] : memref<8x256xbf16, #tpu.memory_space<vmem>>, vector<8x256xbf16>
    tpu.vector_store %arg4[%c0_6, %c0_7], %8 {strides = array<i32>} : memref<8x256xbf16, #tpu.memory_space<vmem>>, vector<8x256xbf16>,
    return
  }
  func.func @transform_0(%arg0: i32) -> (i32, i32) {
    %c0_i32 = arith.constant 0 : i32
    %c0_i32_0 = arith.constant 0 : i32
    %c0_i32_1 = arith.constant 0 : i32
    return %c0_i32, %c0_i32_0 : i32, i32
  }
  func.func @transform_1(%arg0: i32) -> (i32, i32) {
    %c0_i32 = arith.constant 0 : i32
    %c0_i32_0 = arith.constant 0 : i32
    %c0_i32_1 = arith.constant 0 : i32
    return %c0_i32, %c0_i32_0 : i32, i32
  }
  func.func @transform_2(%arg0: i32) -> (i32, i32) {
    %c0_i32 = arith.constant 0 : i32
    %c0_i32_0 = arith.constant 0 : i32
    return %c0_i32, %arg0 : i32, i32
  }
  func.func @transform_3(%arg0: i32) -> (i32, i32) {
    %c0_i32 = arith.constant 0 : i32
    %c0_i32_0 = arith.constant 0 : i32
    return %c0_i32, %arg0 : i32, i32
  }
}

module attributes {stable_mosaic.version = 11 : i64} {
  func.func @_conv_bn_kernel(%arg0: i32, %arg1: memref<8x216xbf16, #tpu.memory_space<vmem>>, %arg2: memref<8x1xf32, #tpu.memory_space<vmem>>, %arg3: memref<216x256xbf16, #tpu.memory_space<vmem>>, %arg4: memref<8x256xbf16, #tpu.memory_space<vmem>>) attributes {dimension_semantics = [#tpu.dimension_semantics<parallel>], iteration_bounds = array<i64: 2>, scalar_prefetch = 0 : i64, scratch_operands = 0 : i64, tpu.core_type = #tpu.core_type<tc>, window_params = [{pipeline_mode = #tpu.pipeline_mode<synchronous>, transform_indices = @transform_0, window_bounds = array<i64: 8, 216>}, {pipeline_mode = #tpu.pipeline_mode<synchronous>, transform_indices = @transform_1, window_bounds = array<i64: 8, 1>}, {transform_indices = @transform_2, window_bounds = array<i64: 216, 256>}, {transform_indices = @transform_3, window_bounds = array<i64: 8, 256>}]} {
    %c0 = arith.constant 0 : index
    %c0_0 = arith.constant 0 : index
    %0 = vector.load %arg1[%c0, %c0_0] : memref<8x216xbf16, #tpu.memory_space<vmem>>, vector<8x216xbf16>
    %c0_1 = arith.constant 0 : index
    %c0_2 = arith.constant 0 : index
    %1 = vector.load %arg3[%c0_1, %c0_2] : memref<216x256xbf16, #tpu.memory_space<vmem>>, vector<216x256xbf16>
    %cst = arith.constant dense<0.000000e+00> : vector<8x256xf32>
    %2 = tpu.matmul %0, %1, %cst {dimension_numbers = #tpu.dot_dimension_numbers<[1], [0], [0], [1], [0, 0, 1, 1], [], []>} : vector<8x216xbf16>, vector<216x256xbf16>, vector<8x256xf32> -> vector<8x256xf32>
    %c0_3 = arith.constant 0 : index
    %c0_4 = arith.constant 0 : index
    %3 = vector.load %arg2[%c0_3, %c0_4] : memref<8x1xf32, #tpu.memory_space<vmem>>, vector<8x1xf32>
    %4 = vector.broadcast %3 : vector<8x1xf32> to vector<8x256xf32>
    %5 = arith.addf %2, %4 : vector<8x256xf32>
    %cst_5 = arith.constant 0.000000e+00 : f32
    %6 = vector.broadcast %cst_5 : f32 to vector<8x256xf32>
    %7 = arith.maximumf %5, %6 : vector<8x256xf32>
    %8 = arith.truncf %7 : vector<8x256xf32> to vector<8x256xbf16>
    %c0_6 = arith.constant 0 : index
    %c0_7 = arith.constant 0 : index
    %9 = vector.load %arg4[%c0_6, %c0_7] : memref<8x256xbf16, #tpu.memory_space<vmem>>, vector<8x256xbf16>
    tpu.vector_store %arg4[%c0_6, %c0_7], %8 {strides = array<i32>} : memref<8x256xbf16, #tpu.memory_space<vmem>>, vector<8x256xbf16>,
    return
  }
  func.func @transform_0(%arg0: i32) -> (i32, i32) {
    %c0_i32 = arith.constant 0 : i32
    %c0_i32_0 = arith.constant 0 : i32
    %c0_i32_1 = arith.constant 0 : i32
    return %c0_i32, %c0_i32_0 : i32, i32
  }
  func.func @transform_1(%arg0: i32) -> (i32, i32) {
    %c0_i32 = arith.constant 0 : i32
    %c0_i32_0 = arith.constant 0 : i32
    %c0_i32_1 = arith.constant 0 : i32
    return %c0_i32, %c0_i32_0 : i32, i32
  }
  func.func @transform_2(%arg0: i32) -> (i32, i32) {
    %c0_i32 = arith.constant 0 : i32
    %c0_i32_0 = arith.constant 0 : i32
    return %c0_i32, %arg0 : i32, i32
  }
  func.func @transform_3(%arg0: i32) -> (i32, i32) {
    %c0_i32 = arith.constant 0 : i32
    %c0_i32_0 = arith.constant 0 : i32
    return %c0_i32, %arg0 : i32, i32
  }
}

module attributes {stable_mosaic.version = 11 : i64} {
  func.func @_conv_bn_kernel(%arg0: i32, %arg1: memref<16x216xbf16, #tpu.memory_space<vmem>>, %arg2: memref<16x1xf32, #tpu.memory_space<vmem>>, %arg3: memref<216x64xbf16, #tpu.memory_space<vmem>>, %arg4: memref<16x64xbf16, #tpu.memory_space<vmem>>) attributes {dimension_semantics = [#tpu.dimension_semantics<parallel>], iteration_bounds = array<i64: 1>, scalar_prefetch = 0 : i64, scratch_operands = 0 : i64, tpu.core_type = #tpu.core_type<tc>, window_params = [{pipeline_mode = #tpu.pipeline_mode<synchronous>, transform_indices = @transform_0, window_bounds = array<i64: 16, 216>}, {pipeline_mode = #tpu.pipeline_mode<synchronous>, transform_indices = @transform_1, window_bounds = array<i64: 16, 1>}, {transform_indices = @transform_2, window_bounds = array<i64: 216, 64>}, {transform_indices = @transform_3, window_bounds = array<i64: 16, 64>}]} {
    %c0 = arith.constant 0 : index
    %c0_0 = arith.constant 0 : index
    %0 = vector.load %arg1[%c0, %c0_0] : memref<16x216xbf16, #tpu.memory_space<vmem>>, vector<16x216xbf16>
    %c0_1 = arith.constant 0 : index
    %c0_2 = arith.constant 0 : index
    %1 = vector.load %arg3[%c0_1, %c0_2] : memref<216x64xbf16, #tpu.memory_space<vmem>>, vector<216x64xbf16>
    %cst = arith.constant dense<0.000000e+00> : vector<16x64xf32>
    %2 = tpu.matmul %0, %1, %cst {dimension_numbers = #tpu.dot_dimension_numbers<[1], [0], [0], [1], [0, 0, 1, 1], [], []>} : vector<16x216xbf16>, vector<216x64xbf16>, vector<16x64xf32> -> vector<16x64xf32>
    %c0_3 = arith.constant 0 : index
    %c0_4 = arith.constant 0 : index
    %3 = vector.load %arg2[%c0_3, %c0_4] : memref<16x1xf32, #tpu.memory_space<vmem>>, vector<16x1xf32>
    %4 = vector.broadcast %3 : vector<16x1xf32> to vector<16x64xf32>
    %5 = arith.addf %2, %4 : vector<16x64xf32>
    %cst_5 = arith.constant 0.000000e+00 : f32
    %6 = vector.broadcast %cst_5 : f32 to vector<16x64xf32>
    %7 = arith.maximumf %5, %6 : vector<16x64xf32>
    %8 = arith.truncf %7 : vector<16x64xf32> to vector<16x64xbf16>
    %c0_6 = arith.constant 0 : index
    %c0_7 = arith.constant 0 : index
    %9 = vector.load %arg4[%c0_6, %c0_7] : memref<16x64xbf16, #tpu.memory_space<vmem>>, vector<16x64xbf16>
    tpu.vector_store %arg4[%c0_6, %c0_7], %8 {strides = array<i32>} : memref<16x64xbf16, #tpu.memory_space<vmem>>, vector<16x64xbf16>,
    return
  }
  func.func @transform_0(%arg0: i32) -> (i32, i32) {
    %c0_i32 = arith.constant 0 : i32
    %c0_i32_0 = arith.constant 0 : i32
    %c0_i32_1 = arith.constant 0 : i32
    return %c0_i32, %c0_i32_0 : i32, i32
  }
  func.func @transform_1(%arg0: i32) -> (i32, i32) {
    %c0_i32 = arith.constant 0 : i32
    %c0_i32_0 = arith.constant 0 : i32
    %c0_i32_1 = arith.constant 0 : i32
    return %c0_i32, %c0_i32_0 : i32, i32
  }
  func.func @transform_2(%arg0: i32) -> (i32, i32) {
    %c0_i32 = arith.constant 0 : i32
    %c0_i32_0 = arith.constant 0 : i32
    return %c0_i32, %arg0 : i32, i32
  }
  func.func @transform_3(%arg0: i32) -> (i32, i32) {
    %c0_i32 = arith.constant 0 : i32
    %c0_i32_0 = arith.constant 0 : i32
    return %c0_i32, %arg0 : i32, i32
  }
}

module attributes {stable_mosaic.version = 11 : i64} {
  func.func @_conv_bn_kernel(%arg0: i32, %arg1: memref<16x432xbf16, #tpu.memory_space<vmem>>, %arg2: memref<16x1xf32, #tpu.memory_space<vmem>>, %arg3: memref<432x64xbf16, #tpu.memory_space<vmem>>, %arg4: memref<16x64xbf16, #tpu.memory_space<vmem>>) attributes {dimension_semantics = [#tpu.dimension_semantics<parallel>], iteration_bounds = array<i64: 1>, scalar_prefetch = 0 : i64, scratch_operands = 0 : i64, tpu.core_type = #tpu.core_type<tc>, window_params = [{pipeline_mode = #tpu.pipeline_mode<synchronous>, transform_indices = @transform_0, window_bounds = array<i64: 16, 432>}, {pipeline_mode = #tpu.pipeline_mode<synchronous>, transform_indices = @transform_1, window_bounds = array<i64: 16, 1>}, {transform_indices = @transform_2, window_bounds = array<i64: 432, 64>}, {transform_indices = @transform_3, window_bounds = array<i64: 16, 64>}]} {
    %c0 = arith.constant 0 : index
    %c0_0 = arith.constant 0 : index
    %0 = vector.load %arg1[%c0, %c0_0] : memref<16x432xbf16, #tpu.memory_space<vmem>>, vector<16x432xbf16>
    %c0_1 = arith.constant 0 : index
    %c0_2 = arith.constant 0 : index
    %1 = vector.load %arg3[%c0_1, %c0_2] : memref<432x64xbf16, #tpu.memory_space<vmem>>, vector<432x64xbf16>
    %cst = arith.constant dense<0.000000e+00> : vector<16x64xf32>
    %2 = tpu.matmul %0, %1, %cst {dimension_numbers = #tpu.dot_dimension_numbers<[1], [0], [0], [1], [0, 0, 1, 1], [], []>} : vector<16x432xbf16>, vector<432x64xbf16>, vector<16x64xf32> -> vector<16x64xf32>
    %c0_3 = arith.constant 0 : index
    %c0_4 = arith.constant 0 : index
    %3 = vector.load %arg2[%c0_3, %c0_4] : memref<16x1xf32, #tpu.memory_space<vmem>>, vector<16x1xf32>
    %4 = vector.broadcast %3 : vector<16x1xf32> to vector<16x64xf32>
    %5 = arith.addf %2, %4 : vector<16x64xf32>
    %cst_5 = arith.constant 0.000000e+00 : f32
    %6 = vector.broadcast %cst_5 : f32 to vector<16x64xf32>
    %7 = arith.maximumf %5, %6 : vector<16x64xf32>
    %8 = arith.truncf %7 : vector<16x64xf32> to vector<16x64xbf16>
    %c0_6 = arith.constant 0 : index
    %c0_7 = arith.constant 0 : index
    %9 = vector.load %arg4[%c0_6, %c0_7] : memref<16x64xbf16, #tpu.memory_space<vmem>>, vector<16x64xbf16>
    tpu.vector_store %arg4[%c0_6, %c0_7], %8 {strides = array<i32>} : memref<16x64xbf16, #tpu.memory_space<vmem>>, vector<16x64xbf16>,
    return
  }
  func.func @transform_0(%arg0: i32) -> (i32, i32) {
    %c0_i32 = arith.constant 0 : i32
    %c0_i32_0 = arith.constant 0 : i32
    %c0_i32_1 = arith.constant 0 : i32
    return %c0_i32, %c0_i32_0 : i32, i32
  }
  func.func @transform_1(%arg0: i32) -> (i32, i32) {
    %c0_i32 = arith.constant 0 : i32
    %c0_i32_0 = arith.constant 0 : i32
    %c0_i32_1 = arith.constant 0 : i32
    return %c0_i32, %c0_i32_0 : i32, i32
  }
  func.func @transform_2(%arg0: i32) -> (i32, i32) {
    %c0_i32 = arith.constant 0 : i32
    %c0_i32_0 = arith.constant 0 : i32
    return %c0_i32, %arg0 : i32, i32
  }
  func.func @transform_3(%arg0: i32) -> (i32, i32) {
    %c0_i32 = arith.constant 0 : i32
    %c0_i32_0 = arith.constant 0 : i32
    return %c0_i32, %arg0 : i32, i32
  }
}

module attributes {stable_mosaic.version = 11 : i64} {
  func.func @_conv_bn_kernel(%arg0: i32, %arg1: memref<64x192xbf16, #tpu.memory_space<vmem>>, %arg2: memref<64x1xf32, #tpu.memory_space<vmem>>, %arg3: memref<192x64xbf16, #tpu.memory_space<vmem>>, %arg4: memref<64x64xbf16, #tpu.memory_space<vmem>>) attributes {dimension_semantics = [#tpu.dimension_semantics<parallel>], iteration_bounds = array<i64: 1>, scalar_prefetch = 0 : i64, scratch_operands = 0 : i64, tpu.core_type = #tpu.core_type<tc>, window_params = [{pipeline_mode = #tpu.pipeline_mode<synchronous>, transform_indices = @transform_0, window_bounds = array<i64: 64, 192>}, {pipeline_mode = #tpu.pipeline_mode<synchronous>, transform_indices = @transform_1, window_bounds = array<i64: 64, 1>}, {transform_indices = @transform_2, window_bounds = array<i64: 192, 64>}, {transform_indices = @transform_3, window_bounds = array<i64: 64, 64>}]} {
    %c0 = arith.constant 0 : index
    %c0_0 = arith.constant 0 : index
    %0 = vector.load %arg1[%c0, %c0_0] : memref<64x192xbf16, #tpu.memory_space<vmem>>, vector<64x192xbf16>
    %c0_1 = arith.constant 0 : index
    %c0_2 = arith.constant 0 : index
    %1 = vector.load %arg3[%c0_1, %c0_2] : memref<192x64xbf16, #tpu.memory_space<vmem>>, vector<192x64xbf16>
    %cst = arith.constant dense<0.000000e+00> : vector<64x64xf32>
    %2 = tpu.matmul %0, %1, %cst {dimension_numbers = #tpu.dot_dimension_numbers<[1], [0], [0], [1], [0, 0, 1, 1], [], []>} : vector<64x192xbf16>, vector<192x64xbf16>, vector<64x64xf32> -> vector<64x64xf32>
    %c0_3 = arith.constant 0 : index
    %c0_4 = arith.constant 0 : index
    %3 = vector.load %arg2[%c0_3, %c0_4] : memref<64x1xf32, #tpu.memory_space<vmem>>, vector<64x1xf32>
    %4 = vector.broadcast %3 : vector<64x1xf32> to vector<64x64xf32>
    %5 = arith.addf %2, %4 : vector<64x64xf32>
    %6 = arith.truncf %5 : vector<64x64xf32> to vector<64x64xbf16>
    %c0_5 = arith.constant 0 : index
    %c0_6 = arith.constant 0 : index
    %7 = vector.load %arg4[%c0_5, %c0_6] : memref<64x64xbf16, #tpu.memory_space<vmem>>, vector<64x64xbf16>
    tpu.vector_store %arg4[%c0_5, %c0_6], %6 {strides = array<i32>} : memref<64x64xbf16, #tpu.memory_space<vmem>>, vector<64x64xbf16>,
    return
  }
  func.func @transform_0(%arg0: i32) -> (i32, i32) {
    %c0_i32 = arith.constant 0 : i32
    %c0_i32_0 = arith.constant 0 : i32
    %c0_i32_1 = arith.constant 0 : i32
    return %c0_i32, %c0_i32_0 : i32, i32
  }
  func.func @transform_1(%arg0: i32) -> (i32, i32) {
    %c0_i32 = arith.constant 0 : i32
    %c0_i32_0 = arith.constant 0 : i32
    %c0_i32_1 = arith.constant 0 : i32
    return %c0_i32, %c0_i32_0 : i32, i32
  }
  func.func @transform_2(%arg0: i32) -> (i32, i32) {
    %c0_i32 = arith.constant 0 : i32
    %c0_i32_0 = arith.constant 0 : i32
    return %c0_i32, %arg0 : i32, i32
  }
  func.func @transform_3(%arg0: i32) -> (i32, i32) {
    %c0_i32 = arith.constant 0 : i32
    %c0_i32_0 = arith.constant 0 : i32
    return %c0_i32, %arg0 : i32, i32
  }
}

module attributes {stable_mosaic.version = 11 : i64} {
  func.func @_conv_bn_kernel(%arg0: i32, %arg1: memref<32x96xbf16, #tpu.memory_space<vmem>>, %arg2: memref<32x1xf32, #tpu.memory_space<vmem>>, %arg3: memref<96x256xbf16, #tpu.memory_space<vmem>>, %arg4: memref<32x256xbf16, #tpu.memory_space<vmem>>) attributes {dimension_semantics = [#tpu.dimension_semantics<parallel>], iteration_bounds = array<i64: 2>, scalar_prefetch = 0 : i64, scratch_operands = 0 : i64, tpu.core_type = #tpu.core_type<tc>, window_params = [{pipeline_mode = #tpu.pipeline_mode<synchronous>, transform_indices = @transform_0, window_bounds = array<i64: 32, 96>}, {pipeline_mode = #tpu.pipeline_mode<synchronous>, transform_indices = @transform_1, window_bounds = array<i64: 32, 1>}, {transform_indices = @transform_2, window_bounds = array<i64: 96, 256>}, {transform_indices = @transform_3, window_bounds = array<i64: 32, 256>}]} {
    %c0 = arith.constant 0 : index
    %c0_0 = arith.constant 0 : index
    %0 = vector.load %arg1[%c0, %c0_0] : memref<32x96xbf16, #tpu.memory_space<vmem>>, vector<32x96xbf16>
    %c0_1 = arith.constant 0 : index
    %c0_2 = arith.constant 0 : index
    %1 = vector.load %arg3[%c0_1, %c0_2] : memref<96x256xbf16, #tpu.memory_space<vmem>>, vector<96x256xbf16>
    %cst = arith.constant dense<0.000000e+00> : vector<32x256xf32>
    %2 = tpu.matmul %0, %1, %cst {dimension_numbers = #tpu.dot_dimension_numbers<[1], [0], [0], [1], [0, 0, 1, 1], [], []>} : vector<32x96xbf16>, vector<96x256xbf16>, vector<32x256xf32> -> vector<32x256xf32>
    %c0_3 = arith.constant 0 : index
    %c0_4 = arith.constant 0 : index
    %3 = vector.load %arg2[%c0_3, %c0_4] : memref<32x1xf32, #tpu.memory_space<vmem>>, vector<32x1xf32>
    %4 = vector.broadcast %3 : vector<32x1xf32> to vector<32x256xf32>
    %5 = arith.addf %2, %4 : vector<32x256xf32>
    %6 = arith.truncf %5 : vector<32x256xf32> to vector<32x256xbf16>
    %c0_5 = arith.constant 0 : index
    %c0_6 = arith.constant 0 : index
    %7 = vector.load %arg4[%c0_5, %c0_6] : memref<32x256xbf16, #tpu.memory_space<vmem>>, vector<32x256xbf16>
    tpu.vector_store %arg4[%c0_5, %c0_6], %6 {strides = array<i32>} : memref<32x256xbf16, #tpu.memory_space<vmem>>, vector<32x256xbf16>,
    return
  }
  func.func @transform_0(%arg0: i32) -> (i32, i32) {
    %c0_i32 = arith.constant 0 : i32
    %c0_i32_0 = arith.constant 0 : i32
    %c0_i32_1 = arith.constant 0 : i32
    return %c0_i32, %c0_i32_0 : i32, i32
  }
  func.func @transform_1(%arg0: i32) -> (i32, i32) {
    %c0_i32 = arith.constant 0 : i32
    %c0_i32_0 = arith.constant 0 : i32
    %c0_i32_1 = arith.constant 0 : i32
    return %c0_i32, %c0_i32_0 : i32, i32
  }
  func.func @transform_2(%arg0: i32) -> (i32, i32) {
    %c0_i32 = arith.constant 0 : i32
    %c0_i32_0 = arith.constant 0 : i32
    return %c0_i32, %arg0 : i32, i32
  }
  func.func @transform_3(%arg0: i32) -> (i32, i32) {
    %c0_i32 = arith.constant 0 : i32
    %c0_i32_0 = arith.constant 0 : i32
    return %c0_i32, %arg0 : i32, i32
  }
}

</mosaic_0001>

<bundles_post_ra>
// kernel: mcahg_forward.6
= control target key start
LH: loop header
LB: loop body
LE: loop exit
PB: predicated region body
PF: predicated region fallthrough
CT: control target
= control target key end

     0   :  { %s600_s12 = smov 0   ;;  %s602_s13 = smov 0   ;;  %s658_s0 = inlined_call_operand.vmem [shape: bf16[8,108], index: 0, kind: input, shape index: {}]   ;;  %s659_s1 = inlined_call_operand.vmem [shape: f32[8,1], index: 1, kind: input, shape index: {}]   ;;  %s660_s2 = inlined_call_operand.vmem [shape: bf16[108,512], index: 2, kind: input, shape index: {}]   ;;  %s661_s3 = inlined_call_operand.vmem [shape: bf16[8,512], index: 3, kind: output, shape index: {}]  }
   0x1   :  { %s604_s14 = smov 0  }
   0x2 LB: > { %s476_s15 = sadd.s32 4294967295, %s577_s14   ;;  %s617_s16 = sadd.s32 1, %s577_s14   ;;  %s577_s14 = sphi %s604_s14, %s664_s14   ;;  %s573_s13 = sphi %s602_s13, %s663_s13   ;;  %s569_s12 = sphi %s600_s12, %s662_s12  }
   0x3   : > { %s59_s17 = ssub.s32 %s577_s14, %s617_s16  ;;  %s62_s18 = sadd.s32 1, %s573_s13 }
   0x4   : > { %p60_p0 = scmp.eq.s32.totalorder %s59_s17, 0  ;;  %p69_p1 = scmp.ne.s32.totalorder %s573_s13, %s569_s12 }
   0x5   : > { %p70_p2 = scmp.eq.s32.totalorder %s577_s14, 0  ;;  %p479_p4 = scmp.ge.s32.totalorder %s577_s14, 2 }
   0x6   : > { %s626_s19 = scalar_select %p60_p0, %s573_s13, %s62_s18  }
   0x7   : > { %p71_p3 = por %p70_p2, %p69_p1  ;;  %127 = sbr.rel (%p479_p4) target bundleno = 23 (0x17), region = 24 }
   0xc   : > { %130 = sbr.rel (!%p71_p3) target bundleno = 23 (0x17), region = 28  ;;  %s132_s20 = sand.u32 (%p71_p3), 1, %s573_s13  }
   0xd   : > { %s504_s21 = sshll.u32 (%p71_p3), %s577_s14, 3  ;;  %s506_s22 = smul.u32 (%p71_p3), 112, %s132_s20 }
   0xe   : > { %s137_s25 = scalar_lea.vmem (%p71_p3), %s660_s2, %s504_s21 }
   0xf   : > { %v192_v0 = vld [vmem:[%s137_s25] sm:$0xff] (%p71_p3)  ;;  %v194_v1 = vld [vmem:[%s137_s25 + $0x10] sm:$0xff] (%p71_p3)  ;;  %s134_s26 = scalar_lea.vmem (%p71_p3), [#allocation2], %s506_s22 }
  0x10   : > { %v196_v2 = vld [vmem:[%s137_s25 + $0x20] sm:$0xff] (%p71_p3)  ;;  %v198_v3 = vld [vmem:[%s137_s25 + $0x30] sm:$0xff] (%p71_p3)  ;;  %193 = vst [vmem:[%s134_s26] sm:$0xff] (%p71_p3), %v192_v0  ;;  %195 = vst [vmem:[%s134_s26 + $0x8] sm:$0xff] (%p71_p3), %v194_v1 }
  0x11   : > { %v200_v4 = vld [vmem:[%s137_s25 + $0x40] sm:$0xff]  ;;  %v202_v5 = vld [vmem:[%s137_s25 + $0x50] sm:$0xff]  ;;  %197 = vst [vmem:[%s134_s26 + $0x10] sm:$0xff] %v196_v2  ;;  %199 = vst [vmem:[%s134_s26 + $0x18] sm:$0xff] %v198_v3 }
  0x12   : > { %201 = vst [vmem:[%s134_s26 + $0x20] sm:$0xff] %v200_v4  ;;  %203 = vst [vmem:[%s134_s26 + $0x28] sm:$0xff] %v202_v5  ;;  %v204_v6 = vld [vmem:[%s137_s25 + $0x60] sm:$0xff]  ;;  %v206_v7 = vld [vmem:[%s137_s25 + $0x70] sm:$0xff] }
  0x13   : > { %v208_v8 = vld [vmem:[%s137_s25 + $0x80] sm:$0xff]  ;;  %205 = vst [vmem:[%s134_s26 + $0x30] sm:$0xff] %v204_v6  ;;  %207 = vst [vmem:[%s134_s26 + $0x38] sm:$0xff] %v206_v7  ;;  %v210_v9 = vld [vmem:[%s137_s25 + $0x90] sm:$0xff] }
  0x14   : > { %209 = vst [vmem:[%s134_s26 + $0x40] sm:$0xff] %v208_v8  ;;  %v212_v10 = vld [vmem:[%s137_s25 + $0xa0] sm:$0xff]  ;;  %v214_v11 = vld [vmem:[%s137_s25 + $0xb0] sm:$0xff]  ;;  %211 = vst [vmem:[%s134_s26 + $0x48] sm:$0xff] %v210_v9 }
  0x15   : > { %213 = vst [vmem:[%s134_s26 + $0x50] sm:$0xff] %v212_v10  ;;  %215 = vst [vmem:[%s134_s26 + $0x58] sm:$0xff] %v214_v11  ;;  %v216_v12 = vld [vmem:[%s137_s25 + $0xc0] sm:$0xff]  ;;  %v218_v13 = vld [vmem:[%s137_s25 + $0xd0] sm:$0xff] }
  0x16   : > { %217 = vst [vmem:[%s134_s26 + $0x60] sm:$0xff] %v216_v12  ;;  %219 = vst [vmem:[%s134_s26 + $0x68] sm:$0xff] %v218_v13 }
  0x17 PF: > { %p482_p5 = scmp.ge.s32.totalorder %s577_s14, 1  ;;  %p224_p6 = scmp.lt.s32.totalorder %s577_s14, 3 }
  0x19   : > { %p225_p7 = pnand %p482_p5, %p224_p6 }
  0x1a   : > { %s231_s27 = sand.u32 (!%p225_p7), 1, %s569_s12   ;;  %s483_s7 = sshll.u32 (!%p225_p7), %s476_s15, 1 }
  0x1b   : > { %228 = sbr.rel (%p225_p7) target bundleno = 264 (0x108), region = 66  ;;  %p256_p8 = scmp.lt.s32.totalorder (!%p225_p7), %s483_s7, 3 }
  0x1c   : > { %s507_s28 = smul.u32 (!%p225_p7), 112, %s231_s27 }
  0x1e   : > { %s233_s4 = scalar_lea.vmem (!%p225_p7), [#allocation2], %s507_s28 }
  0x20   : > { %v579_v14 = vmov 0   ;;  %v277_v15 = vld [vmem:[%s659_s1] sm:$0xff]  ;;  %vm355_vm0 = vcmask 1045504   ;;  %vm351_vm1 = vcmask 883712   ;;  %s666_s7 = smov (!%p256_p8, %s483_s7), 3 }
  0x21   : > { %394 = vmatprep.mubr.bf16.mxu0 %v579_v14  ;;  %533 = vset.pattern.permute.xlu0 %v579_v14  ;;  %v534_v16 = vld [vmem:[%s233_s4 + $0x64] ss:$8 sps:$4 sm:$0x3f]   ;;  %v536_v17 = vld [vmem:[%s233_s4 + $0x60] ss:$8 sps:$4 sm:$0x3f]  }
  0x22   : > { %280 = vperm.xlu0 %533, %v277_v15   ;;  %499 = vmatprep.subr.msk.bf16.mxu0 %vm355_vm0, %v534_v16  ;;  %v537_v18 = vld [vmem:[%s233_s4 + $0x54] ss:$8 sps:$4 sm:$0xff]   ;;  %v357_v19 = vsel %vm355_vm0, %v536_v17, 0  ;;  %v539_v20 = vld [vmem:[%s233_s4 + $0x50] ss:$8 sps:$4 sm:$0xff]   ;;  %s484_s8 = sshll.u32 %s666_s7, 2 }
  0x23   : > { %365 = vmatpush1.bf16.msra.mxu0 %v357_v19  ;;  %v540_v21 = vld [vmem:[%s233_s4 + $0x44] ss:$8 sps:$4 sm:$0xff]   ;;  %v542_v22 = vld [vmem:[%s233_s4 + $0x40] ss:$8 sps:$4 sm:$0xff]   ;;  %v543_v23 = vld [vmem:[%s233_s4 + $0x34] ss:$8 sps:$4 sm:$0xff]   ;;  %s259_s11 = scalar_lea.vmem %s661_s3, %s484_s8 }
  0x24   : > { %366 = vmatprep.subr.bf16.mxu0 %v537_v18  ;;  %v545_v24 = vld [vmem:[%s233_s4 + $0x30] ss:$8 sps:$4 sm:$0xff]   ;;  %v546_v25 = vld [vmem:[%s233_s4 + $0x24] ss:$8 sps:$4 sm:$0xff]   ;;  %v548_v26 = vld [vmem:[%s233_s4 + $0x20] ss:$8 sps:$4 sm:$0xff]  }
  0x25   : > { %v549_v27 = vld [vmem:[%s233_s4 + $0x14] ss:$8 sps:$4 sm:$0xff]   ;;  %v551_v28 = vld [vmem:[%s233_s4 + $0x10] ss:$8 sps:$4 sm:$0xff]   ;;  %v552_v29 = vld [vmem:[%s233_s4 + $0x4] ss:$8 sps:$4 sm:$0xff]  }
  0x26   : > { %v554_v30 = vld [vmem:[%s233_s4] ss:$8 sps:$4 sm:$0xff]  }
  0x27   : > { %367 = vmatpush1.bf16.msra.mxu0 %v539_v20  ;;  %v262_v31 = vld [vmem:[%s658_s0] sm:$0xf] }
  0x28   : > { %368 = vmatprep.subr.bf16.mxu0 %v540_v21 }
  0x2b   : > { %369 = vmatpush1.bf16.msra.mxu0 %v542_v22 }
  0x2c   : > { %370 = vmatprep.subr.bf16.mxu0 %v543_v23 }
  0x2f   : > { %371 = vmatpush1.bf16.msra.mxu0 %v545_v24 }
  0x30   : > { %372 = vmatprep.subr.bf16.mxu0 %v546_v25 }
  0x33   : > { %373 = vmatpush1.bf16.msra.mxu0 %v548_v26 }
  0x34   : > { %374 = vmatprep.subr.bf16.mxu0 %v549_v27 }
  0x37   : > { %375 = vmatpush1.bf16.msra.mxu0 %v551_v28 }
  0x38   : > { %376 = vmatprep.subr.bf16.mxu0 %v552_v29 }
  0x3b   : > { %377 = vmatpush1.bf16.msra.mxu0 %v554_v30 }
  0x3e   : > { %500 = vmatmul.mubr.msk.bf16.vlgmr.msra.gmra.mxu0 %vm351_vm1, %v262_v31 }
  0x9d   : > { %v281_v32 = vpop.permute.xlu0 %280 }
  0xfe   : > { %v396_v33 = vpop.f32.mrf.mxu0 }
  0xff   : > { %v397_v34 = vadd.f32 %v396_v33, %v281_v32 }
 0x100   : > { %v398_v35 = vpop.f32.mrf.mxu0 }
 0x101   : > { %v399_v36 = vadd.f32 %v398_v35, %v281_v32  ;;  %v403_v38 = vmax.f32 %v397_v34, 0.0 }
 0x102   : > { %v400_v37 = vpop.f32.mrf.mxu0 }
 0x103   : > { %v404_v39 = vmax.f32 %v399_v36, 0.0 }
 0x104   : > { %v401_v40 = vpop.f32.mrf.mxu0 }
 0x105   : > { %v505_v41 = vpack.c.bf16 %v404_v39, %v403_v38 }
 0x107   : > { %413 = vst [vmem:[%s259_s11] sm:$0xff] %v505_v41 }
 0x108 PF: > { %p10_p9 = scmp.ge.s32.totalorder %s617_s16, 4   ;;  %s662_s12 = smov %s573_s13 }
 0x109   : > { %s663_s13 = smov %s626_s19  ;;  %s664_s14 = smov %s617_s16 }
 0x10a   :  { %12 = sbr.rel (!%p10_p9) target bundleno = 2 (0x2), region = 105 }

// kernel: mcahg_forward.7
= control target key start
LH: loop header
LB: loop body
LE: loop exit
PB: predicated region body
PF: predicated region fallthrough
CT: control target
= control target key end

     0   :  { %s776_s12 = smov 0   ;;  %s778_s13 = smov 0   ;;  %s927_s0 = inlined_call_operand.vmem [shape: bf16[8,216], index: 0, kind: input, shape index: {}]   ;;  %s928_s1 = inlined_call_operand.vmem [shape: f32[8,1], index: 1, kind: input, shape index: {}]   ;;  %s929_s2 = inlined_call_operand.vmem [shape: bf16[216,512], index: 2, kind: input, shape index: {}]   ;;  %s930_s3 = inlined_call_operand.vmem [shape: bf16[8,512], index: 3, kind: output, shape index: {}]  }
   0x1   :  { %s780_s14 = smov 0  }
   0x2 LB: > { %s614_s15 = sadd.s32 4294967295, %s753_s14   ;;  %s793_s16 = sadd.s32 1, %s753_s14   ;;  %s753_s14 = sphi %s780_s14, %s933_s14   ;;  %s749_s13 = sphi %s778_s13, %s932_s13   ;;  %s745_s12 = sphi %s776_s12, %s931_s12  }
   0x3   : > { %s59_s17 = ssub.s32 %s753_s14, %s793_s16  ;;  %s62_s18 = sadd.s32 1, %s749_s13 }
   0x4   : > { %p60_p0 = scmp.eq.s32.totalorder %s59_s17, 0  ;;  %p69_p1 = scmp.ne.s32.totalorder %s749_s13, %s745_s12 }
   0x5   : > { %p70_p2 = scmp.eq.s32.totalorder %s753_s14, 0  ;;  %p617_p4 = scmp.ge.s32.totalorder %s753_s14, 2 }
   0x6   : > { %s802_s19 = scalar_select %p60_p0, %s749_s13, %s62_s18  }
   0x7   : > { %p71_p3 = por %p70_p2, %p69_p1  ;;  %127 = sbr.rel (%p617_p4) target bundleno = 30 (0x1e), region = 24 }
   0xc   : > { %130 = sbr.rel (!%p71_p3) target bundleno = 30 (0x1e), region = 28  ;;  %s132_s20 = sand.u32 (%p71_p3), 1, %s749_s13  }
   0xd   : > { %s658_s21 = sshll.u32 (%p71_p3), %s753_s14, 3  ;;  %s660_s22 = smul.u32 (%p71_p3), 216, %s132_s20 }
   0xe   : > { %s810_s25 = scalar_lea.vmem (%p71_p3), %s929_s2, %s658_s21 }
   0xf   : > { %v218_v0 = vld [vmem:[%s810_s25] sm:$0xff] (%p71_p3)  ;;  %v220_v1 = vld [vmem:[%s810_s25 + $0x10] sm:$0xff] (%p71_p3)  ;;  %s818_s26 = scalar_lea.vmem (%p71_p3), [#allocation2], %s660_s22 }
  0x10   : > { %v222_v2 = vld [vmem:[%s810_s25 + $0x20] sm:$0xff] (%p71_p3)  ;;  %v224_v3 = vld [vmem:[%s810_s25 + $0x30] sm:$0xff] (%p71_p3)  ;;  %219 = vst [vmem:[%s818_s26] sm:$0xff] (%p71_p3), %v218_v0  ;;  %221 = vst [vmem:[%s818_s26 + $0x8] sm:$0xff] (%p71_p3), %v220_v1 }
  0x11   : > { %v226_v4 = vld [vmem:[%s810_s25 + $0x40] sm:$0xff]  ;;  %v228_v5 = vld [vmem:[%s810_s25 + $0x50] sm:$0xff]  ;;  %223 = vst [vmem:[%s818_s26 + $0x10] sm:$0xff] %v222_v2  ;;  %225 = vst [vmem:[%s818_s26 + $0x18] sm:$0xff] %v224_v3 }
  0x12   : > { %227 = vst [vmem:[%s818_s26 + $0x20] sm:$0xff] %v226_v4  ;;  %229 = vst [vmem:[%s818_s26 + $0x28] sm:$0xff] %v228_v5  ;;  %v230_v6 = vld [vmem:[%s810_s25 + $0x60] sm:$0xff]  ;;  %v232_v7 = vld [vmem:[%s810_s25 + $0x70] sm:$0xff] }
  0x13   : > { %v234_v8 = vld [vmem:[%s810_s25 + $0x80] sm:$0xff]  ;;  %231 = vst [vmem:[%s818_s26 + $0x30] sm:$0xff] %v230_v6  ;;  %233 = vst [vmem:[%s818_s26 + $0x38] sm:$0xff] %v232_v7  ;;  %v236_v9 = vld [vmem:[%s810_s25 + $0x90] sm:$0xff] }
  0x14   : > { %235 = vst [vmem:[%s818_s26 + $0x40] sm:$0xff] %v234_v8  ;;  %v238_v10 = vld [vmem:[%s810_s25 + $0xa0] sm:$0xff]  ;;  %v240_v11 = vld [vmem:[%s810_s25 + $0xb0] sm:$0xff]  ;;  %237 = vst [vmem:[%s818_s26 + $0x48] sm:$0xff] %v236_v9 }
  0x15   : > { %239 = vst [vmem:[%s818_s26 + $0x50] sm:$0xff] %v238_v10  ;;  %241 = vst [vmem:[%s818_s26 + $0x58] sm:$0xff] %v240_v11  ;;  %v242_v12 = vld [vmem:[%s810_s25 + $0xc0] sm:$0xff]  ;;  %v244_v13 = vld [vmem:[%s810_s25 + $0xd0] sm:$0xff] }
  0x16   : > { %v246_v14 = vld [vmem:[%s810_s25 + $0xe0] sm:$0xff]  ;;  %243 = vst [vmem:[%s818_s26 + $0x60] sm:$0xff] %v242_v12  ;;  %245 = vst [vmem:[%s818_s26 + $0x68] sm:$0xff] %v244_v13  ;;  %v248_v15 = vld [vmem:[%s810_s25 + $0xf0] sm:$0xff] }
  0x17   : > { %247 = vst [vmem:[%s818_s26 + $0x70] sm:$0xff] %v246_v14  ;;  %v250_v16 = vld [vmem:[%s810_s25 + $0x100] sm:$0xff]  ;;  %v252_v17 = vld [vmem:[%s810_s25 + $0x110] sm:$0xff]  ;;  %249 = vst [vmem:[%s818_s26 + $0x78] sm:$0xff] %v248_v15 }
  0x18   : > { %251 = vst [vmem:[%s818_s26 + $0x80] sm:$0xff] %v250_v16  ;;  %253 = vst [vmem:[%s818_s26 + $0x88] sm:$0xff] %v252_v17  ;;  %v254_v18 = vld [vmem:[%s810_s25 + $0x120] sm:$0xff]  ;;  %v256_v19 = vld [vmem:[%s810_s25 + $0x130] sm:$0xff] }
  0x19   : > { %v258_v20 = vld [vmem:[%s810_s25 + $0x140] sm:$0xff]  ;;  %255 = vst [vmem:[%s818_s26 + $0x90] sm:$0xff] %v254_v18  ;;  %257 = vst [vmem:[%s818_s26 + $0x98] sm:$0xff] %v256_v19  ;;  %v260_v21 = vld [vmem:[%s810_s25 + $0x150] sm:$0xff] }
  0x1a   : > { %259 = vst [vmem:[%s818_s26 + $0xa0] sm:$0xff] %v258_v20  ;;  %v262_v22 = vld [vmem:[%s810_s25 + $0x160] sm:$0xff]  ;;  %v264_v23 = vld [vmem:[%s810_s25 + $0x170] sm:$0xff]  ;;  %261 = vst [vmem:[%s818_s26 + $0xa8] sm:$0xff] %v260_v21 }
  0x1b   : > { %263 = vst [vmem:[%s818_s26 + $0xb0] sm:$0xff] %v262_v22  ;;  %265 = vst [vmem:[%s818_s26 + $0xb8] sm:$0xff] %v264_v23  ;;  %v266_v24 = vld [vmem:[%s810_s25 + $0x180] sm:$0xff]  ;;  %v268_v25 = vld [vmem:[%s810_s25 + $0x190] sm:$0xff] }
  0x1c   : > { %v270_v26 = vld [vmem:[%s810_s25 + $0x1a0] sm:$0xff]  ;;  %267 = vst [vmem:[%s818_s26 + $0xc0] sm:$0xff] %v266_v24  ;;  %269 = vst [vmem:[%s818_s26 + $0xc8] sm:$0xff] %v268_v25 }
  0x1d   : > { %271 = vst [vmem:[%s818_s26 + $0xd0] sm:$0xff] %v270_v26 }
  0x1e PF: > { %p620_p5 = scmp.ge.s32.totalorder %s753_s14, 1  ;;  %p276_p6 = scmp.lt.s32.totalorder %s753_s14, 3 }
  0x20   : > { %p277_p7 = pnand %p620_p5, %p276_p6 }
  0x21   : > { %s283_s27 = sand.u32 (!%p277_p7), 1, %s745_s12   ;;  %s621_s7 = sshll.u32 (!%p277_p7), %s614_s15, 1 }
  0x22   : > { %280 = sbr.rel (%p277_p7) target bundleno = 298 (0x12a), region = 66  ;;  %p308_p8 = scmp.lt.s32.totalorder (!%p277_p7), %s621_s7, 3 }
  0x23   : > { %s661_s5 = smul.u32 (!%p277_p7), 216, %s283_s27 }
  0x25   : > { %s881_s6 = scalar_lea.vmem (!%p277_p7), [#allocation2], %s661_s5 }
  0x27   : > { %v874_v27 = vld [vmem:[%s927_s0] sm:$0xff]  ;;  %vm489_vm0 = vcmask 719872   ;;  %v755_v30 = vmov 0   ;;  %v688_v31 = vld [vmem:[%s881_s6 + $0x74] ss:$8 sps:$4 sm:$0xff]   ;;  %vm493_vm1 = vcmask 1043456  }
  0x28   : > { %v342_v28 = vld [vmem:[%s928_s1] sm:$0xff]  ;;  %v624_v29 = vcombine.high %v874_v27, %v874_v27  ;;  %687 = vset.pattern.permute.xlu0 %v755_v30  ;;  %v690_v32 = vld [vmem:[%s881_s6 + $0x70] ss:$8 sps:$4 sm:$0xff]   ;;  %500 = vmatprep.subr.bf16.mxu0 %v688_v31  ;;  %v694_v35 = vld [vmem:[%s881_s6 + $0x54] ss:$8 sps:$4 sm:$0xff]   ;;  %v623_v61 = vcombine.low %v874_v27, %v874_v27  ;;  %s935_s7 = smov (!%p308_p8, %s621_s7), 3 }
  0x29   : > { %345 = vperm.xlu0 %687, %v342_v28   ;;  %v691_v33 = vld [vmem:[%s881_s6 + $0x64] ss:$8 sps:$4 sm:$0xff]   ;;  %501 = vmatpush1.bf16.msra.mxu0 %v690_v32  ;;  %v693_v34 = vld [vmem:[%s881_s6 + $0x60] ss:$8 sps:$4 sm:$0xff]   ;;  %v696_v36 = vld [vmem:[%s881_s6 + $0x50] ss:$8 sps:$4 sm:$0xff]  }
  0x2a   : > { %654 = vmatprep.mubr.msk.bf16.mxu0 %vm489_vm0, %v624_v29  ;;  %502 = vmatprep.subr.bf16.mxu0 %v691_v33  ;;  %v697_v37 = vld [vmem:[%s881_s6 + $0x44] ss:$8 sps:$4 sm:$0xff]   ;;  %v699_v38 = vld [vmem:[%s881_s6 + $0x40] ss:$8 sps:$4 sm:$0xff]   ;;  %v700_v39 = vld [vmem:[%s881_s6 + $0x34] ss:$8 sps:$4 sm:$0xff]  }
  0x2b   : > { %v702_v40 = vld [vmem:[%s881_s6 + $0x30] ss:$8 sps:$4 sm:$0xff]   ;;  %v703_v41 = vld [vmem:[%s881_s6 + $0x24] ss:$8 sps:$4 sm:$0xff]   ;;  %v705_v42 = vld [vmem:[%s881_s6 + $0x20] ss:$8 sps:$4 sm:$0xff]  }
  0x2c   : > { %v706_v43 = vld [vmem:[%s881_s6 + $0x14] ss:$8 sps:$4 sm:$0xff]   ;;  %v708_v44 = vld [vmem:[%s881_s6 + $0x10] ss:$8 sps:$4 sm:$0xff]   ;;  %v709_v45 = vld [vmem:[%s881_s6 + $0x4] ss:$8 sps:$4 sm:$0xff]  }
  0x2d   : > { %503 = vmatpush1.bf16.msra.mxu0 %v693_v34  ;;  %v341_v46 = vld [vmem:[%s881_s6 + $0xd0] sm:$0xff]  ;;  %v711_v47 = vld [vmem:[%s881_s6] ss:$8 sps:$4 sm:$0xff]   ;;  %v714_v51 = vld [vmem:[%s881_s6 + $0xc4] ss:$8 sps:$4 sm:$0xff]   ;;  %s622_s8 = sshll.u32 %s935_s7, 2 }
  0x2e   : > { %504 = vmatprep.subr.bf16.mxu0 %v694_v35  ;;  %v652_v48 = vcombine.high %v341_v46, %v341_v46  ;;  %v651_v49 = vcombine.low %v341_v46, %v341_v46  ;;  %v716_v52 = vld [vmem:[%s881_s6 + $0xc0] ss:$8 sps:$4 sm:$0xff]   ;;  %v717_v53 = vld [vmem:[%s881_s6 + $0xb4] ss:$8 sps:$4 sm:$0xff]   ;;  %v719_v54 = vld [vmem:[%s881_s6 + $0xb0] ss:$8 sps:$4 sm:$0xff]   ;;  %s311_s11 = scalar_lea.vmem %s930_s3, %s622_s8 }
  0x2f   : > { %v720_v55 = vld [vmem:[%s881_s6 + $0xa4] ss:$8 sps:$4 sm:$0xff]   ;;  %v722_v56 = vld [vmem:[%s881_s6 + $0xa0] ss:$8 sps:$4 sm:$0xff]   ;;  %v723_v57 = vld [vmem:[%s881_s6 + $0x94] ss:$8 sps:$4 sm:$0xff]  }
  0x30   : > { %v495_v50 = vsel %vm493_vm1, %v651_v49, 0  ;;  %v725_v58 = vld [vmem:[%s881_s6 + $0x90] ss:$8 sps:$4 sm:$0xff]   ;;  %v726_v59 = vld [vmem:[%s881_s6 + $0x84] ss:$8 sps:$4 sm:$0xff]  }
  0x31   : > { %505 = vmatpush1.bf16.msra.mxu0 %v696_v36  ;;  %v728_v60 = vld [vmem:[%s881_s6 + $0x80] ss:$8 sps:$4 sm:$0xff]  }
  0x32   : > { %506 = vmatprep.subr.bf16.mxu0 %v697_v37 }
  0x35   : > { %507 = vmatpush1.bf16.msra.mxu0 %v699_v38 }
  0x36   : > { %508 = vmatprep.subr.bf16.mxu0 %v700_v39 }
  0x39   : > { %509 = vmatpush1.bf16.msra.mxu0 %v702_v40 }
  0x3a   : > { %510 = vmatprep.subr.bf16.mxu0 %v703_v41 }
  0x3d   : > { %511 = vmatpush1.bf16.msra.mxu0 %v705_v42 }
  0x3e   : > { %512 = vmatprep.subr.bf16.mxu0 %v706_v43 }
  0x41   : > { %513 = vmatpush1.bf16.msra.mxu0 %v708_v44 }
  0x42   : > { %514 = vmatprep.subr.bf16.mxu0 %v709_v45 }
  0x45   : > { %515 = vmatpush1.bf16.msra.mxu0 %v711_v47 }
  0x46   : > { %653 = vmatprep.subr.msk.bf16.mxu0 %vm493_vm1, %v652_v48 }
  0x49   : > { %521 = vmatpush2.bf16.msra.mxu0 %v495_v50 }
  0x4a   : > { %522 = vmatprep.subr.bf16.mxu0 %v714_v51 }
  0x4d   : > { %523 = vmatpush2.bf16.msra.mxu0 %v716_v52 }
  0x4e   : > { %524 = vmatprep.subr.bf16.mxu0 %v717_v53 }
  0x51   : > { %525 = vmatpush2.bf16.msra.mxu0 %v719_v54 }
  0x52   : > { %526 = vmatprep.subr.bf16.mxu0 %v720_v55 }
  0x55   : > { %527 = vmatpush2.bf16.msra.mxu0 %v722_v56 }
  0x56   : > { %528 = vmatprep.subr.bf16.mxu0 %v723_v57 }
  0x59   : > { %529 = vmatpush2.bf16.msra.mxu0 %v725_v58 }
  0x5a   : > { %530 = vmatprep.subr.bf16.mxu0 %v726_v59 }
  0x5d   : > { %531 = vmatpush2.bf16.msra.mxu0 %v728_v60 }
  0x60   : > { %533 = vmatmul.mubr.bf16.vlgmr.msra.gmra.mxu0 %v623_v61 }
  0xa4   : > { %v346_v62 = vpop.permute.xlu0 %345 }
 0x120   : > { %v534_v63 = vpop.f32.mrf.mxu0 }
 0x121   : > { %v535_v0 = vadd.f32 %v534_v63, %v346_v62 }
 0x122   : > { %v536_v1 = vpop.f32.mrf.mxu0 }
 0x123   : > { %v537_v2 = vadd.f32 %v536_v1, %v346_v62  ;;  %v541_v4 = vmax.f32 %v535_v0, 0.0 }
 0x124   : > { %v538_v3 = vpop.f32.mrf.mxu0 }
 0x125   : > { %v542_v5 = vmax.f32 %v537_v2, 0.0 }
 0x126   : > { %v539_v6 = vpop.f32.mrf.mxu0 }
 0x127   : > { %v659_v7 = vpack.c.bf16 %v542_v5, %v541_v4 }
 0x129   : > { %551 = vst [vmem:[%s311_s11] sm:$0xff] %v659_v7 }
 0x12a PF: > { %p10_p9 = scmp.ge.s32.totalorder %s793_s16, 4   ;;  %s931_s12 = smov %s749_s13 }
 0x12b   : > { %s932_s13 = smov %s802_s19  ;;  %s933_s14 = smov %s793_s16 }
 0x12c   :  { %12 = sbr.rel (!%p10_p9) target bundleno = 2 (0x2), region = 105 }

// kernel: mcahg_forward.8
= control target key start
LH: loop header
LB: loop body
LE: loop exit
PB: predicated region body
PF: predicated region fallthrough
CT: control target
= control target key end

     0   :  { %v252_v0 = vmov 0   ;;  %vm146_vm0 = vcmask 719872   ;;  %vm150_vm1 = vcmask 1043456   ;;  %vm205_vm2 = vcmask 519168   ;;  %s333_s2 = inlined_call_operand.vmem [shape: bf16[216,64], index: 2, kind: input, shape index: {}]   ;;  %s334_s0 = inlined_call_operand.vmem [shape: bf16[16,216], index: 0, kind: input, shape index: {}]   ;;  %s335_s1 = inlined_call_operand.vmem [shape: f32[16,1], index: 1, kind: input, shape index: {}]   ;;  %s336_s3 = inlined_call_operand.vmem [shape: bf16[16,64], index: 3, kind: output, shape index: {}]  }
   0x1   :  { %154 = vmatprep.subr.bf16.mxu0 %v252_v0  ;;  %v235_v1 = vld [vmem:[%s333_s2 + $0x38] sm:$0xff]   ;;  %234 = vset.pattern.permute.xlu0 %v252_v0  ;;  %v236_v2 = vld [vmem:[%s333_s2 + $0x30] sm:$0xff]   ;;  %v237_v3 = vld [vmem:[%s333_s2 + $0x28] sm:$0xff]  }
   0x2   :  { %155 = vmatpush1.bf16.msra.mxu0 %v235_v1  ;;  %v238_v4 = vld [vmem:[%s333_s2 + $0x20] sm:$0xff]   ;;  %v239_v5 = vld [vmem:[%s333_s2 + $0x18] sm:$0xff]   ;;  %v45_v8 = vld [vmem:[%s335_s1 + $0x8] sm:$0xff] }
   0x3   :  { %156 = vmatprep.subr.bf16.mxu0 %v252_v0  ;;  %v251_v6 = vld [vmem:[%s334_s0 + $0x4] ss:$8 sps:$4 sm:$0xff]   ;;  %v240_v9 = vld [vmem:[%s333_s2 + $0x10] sm:$0xff]   ;;  %v243_v12 = vld [vmem:[%s333_s2 + $0x68] ss:$0 sps:$4 sm:$0xff]  }
   0x4   :  { %v44_v7 = vld [vmem:[%s335_s1] sm:$0xff]  ;;  %228 = vmatprep.mubr.msk.bf16.mxu0 %vm146_vm0, %v251_v6  ;;  %v241_v10 = vld [vmem:[%s333_s2 + $0x8] sm:$0xff]   ;;  %v152_v13 = vsel %vm150_vm1, %v243_v12, 0  ;;  %v245_v15 = vld [vmem:[%s333_s2 + $0x58] sm:$0xff]  }
   0x5   :  { %48 = vperm.xlu0 %234, %v44_v7   ;;  %v242_v11 = vld [vmem:[%s333_s2] sm:$0xff]   ;;  %v246_v16 = vld [vmem:[%s333_s2 + $0x50] sm:$0xff]   ;;  %v247_v17 = vld [vmem:[%s333_s2 + $0x48] sm:$0xff]  }
   0x6   :  { %157 = vmatpush1.bf16.msra.mxu0 %v236_v2  ;;  %v244_v14 = vld [vmem:[%s333_s2 + $0x60] sm:$0xff]  }
   0x7   :  { %158 = vmatprep.subr.bf16.mxu0 %v252_v0  ;;  %v248_v18 = vld [vmem:[%s333_s2 + $0x40] sm:$0xff]  }
   0x8   :  { %v249_v19 = vld [vmem:[%s334_s0] ss:$8 sps:$4 sm:$0xff]  }
   0x9   :  { %53 = vperm.xlu0 %234, %v45_v8  }
   0xa   :  { %159 = vmatpush1.bf16.msra.mxu0 %v237_v3 }
   0xb   :  { %160 = vmatprep.subr.bf16.mxu0 %v252_v0 }
   0xe   :  { %161 = vmatpush1.bf16.msra.mxu0 %v238_v4 }
   0xf   :  { %162 = vmatprep.subr.bf16.mxu0 %v252_v0 }
  0x12   :  { %163 = vmatpush1.bf16.msra.mxu0 %v239_v5 }
  0x13   :  { %164 = vmatprep.subr.bf16.mxu0 %v252_v0 }
  0x16   :  { %165 = vmatpush1.bf16.msra.mxu0 %v240_v9 }
  0x17   :  { %166 = vmatprep.subr.bf16.mxu0 %v252_v0 }
  0x1a   :  { %167 = vmatpush1.bf16.msra.mxu0 %v241_v10 }
  0x1b   :  { %168 = vmatprep.subr.bf16.mxu0 %v252_v0 }
  0x1e   :  { %169 = vmatpush1.bf16.msra.mxu0 %v242_v11 }
  0x1f   :  { %174 = vmatprep.subr.bf16.mxu0 %v252_v0 }
  0x22   :  { %175 = vmatpush2.bf16.msra.mxu0 %v152_v13 }
  0x23   :  { %176 = vmatprep.subr.bf16.mxu0 %v252_v0 }
  0x26   :  { %177 = vmatpush2.bf16.msra.mxu0 %v244_v14 }
  0x27   :  { %178 = vmatprep.subr.bf16.mxu0 %v252_v0 }
  0x2a   :  { %179 = vmatpush2.bf16.msra.mxu0 %v245_v15 }
  0x2b   :  { %180 = vmatprep.subr.bf16.mxu0 %v252_v0 }
  0x2e   :  { %181 = vmatpush2.bf16.msra.mxu0 %v246_v16 }
  0x2f   :  { %182 = vmatprep.subr.bf16.mxu0 %v252_v0 }
  0x32   :  { %183 = vmatpush2.bf16.msra.mxu0 %v247_v17 }
  0x33   :  { %184 = vmatprep.subr.bf16.mxu0 %v252_v0 }
  0x36   :  { %185 = vmatpush2.bf16.msra.mxu0 %v248_v18 }
  0x39   :  { %187 = vmatmul.mubr.bf16.vlgmr.msra.gmra.mxu0 %v249_v19 }
  0x80   :  { %v49_v20 = vpop.permute.xlu0 %48 }
  0x84   :  { %v54_v25 = vpop.permute.xlu0 %53 }
  0xf9   :  { %v188_v21 = vpop.f32.mrf.mxu0 }
  0xfa   :  { %v189_v22 = vadd.f32 %v188_v21, %v49_v20 }
  0xfb   :  { %v190_v23 = vpop.f32.mrf.mxu0 }
  0xfc   :  { %v195_v24 = vmax.f32 %v189_v22, 0.0 }
  0xfd   :  { %v191_v26 = vpop.f32.mrf.mxu0 }
  0xfe   :  { %v231_v27 = vpack.c.bf16 %v195_v24, %v195_v24  ;;  %v192_v28 = vadd.f32 %v191_v26, %v54_v25 }
  0xff   :  { %v193_v29 = vpop.f32.mrf.mxu0 }
 0x100   :  { %206 = vst.msk [vmem:[%s336_s3] sm:$0xf] %vm205_vm2, %v231_v27  ;;  %v196_v30 = vmax.f32 %v192_v28, 0.0 }
 0x102   :  { %v232_v31 = vpack.c.bf16 %v196_v30, %v196_v30 }
 0x104   :  { %207 = vst.msk [vmem:[%s336_s3 + $0x4] sm:$0xf] %vm205_vm2, %v232_v31 }

// kernel: mcahg_forward.9
= control target key start
LH: loop header
LB: loop body
LE: loop exit
PB: predicated region body
PF: predicated region fallthrough
CT: control target
= control target key end

     0   :  { %v462_v0 = vmov 0   ;;  %vm266_vm0 = vcmask 392192   ;;  %vm362_vm1 = vcmask 519168   ;;  %s600_s2 = inlined_call_operand.vmem [shape: bf16[432,64], index: 2, kind: input, shape index: {}]   ;;  %s601_s0 = inlined_call_operand.vmem [shape: bf16[16,432], index: 0, kind: input, shape index: {}]   ;;  %s602_s1 = inlined_call_operand.vmem [shape: f32[16,1], index: 1, kind: input, shape index: {}]   ;;  %s603_s3 = inlined_call_operand.vmem [shape: bf16[16,64], index: 3, kind: output, shape index: {}]  }
   0x1   :  { %311 = vmatprep.subr.bf16.mxu1 %v462_v0  ;;  %v429_v1 = vld [vmem:[%s600_s2 + $0x78] sm:$0xff]   ;;  %428 = vset.pattern.permute.xlu0 %v462_v0  ;;  %v432_v4 = vld [vmem:[%s600_s2 + $0x70] sm:$0xff]   ;;  %v435_v7 = vld [vmem:[%s600_s2 + $0x68] sm:$0xff]  }
   0x2   :  { %v430_v2 = vld [vmem:[%s600_s2 + $0xb8] sm:$0xff]   ;;  %405 = vmatprep.subr.bf16.mxu0 %v429_v1  ;;  %v433_v5 = vld [vmem:[%s600_s2 + $0xb0] sm:$0xff]   ;;  %v436_v8 = vld [vmem:[%s600_s2 + $0xa8] sm:$0xff]  }
   0x3   :  { %v431_v3 = vld [vmem:[%s600_s2 + $0x38] sm:$0xff]   ;;  %312 = vmatpush1.bf16.msra.mxu1 %v430_v2  ;;  %v434_v6 = vld [vmem:[%s600_s2 + $0x30] sm:$0xff]   ;;  %v437_v9 = vld [vmem:[%s600_s2 + $0x28] sm:$0xff]  }
   0x4   :  { %406 = vmatpush3.bf16.msra.mxu0 %v431_v3  ;;  %313 = vmatprep.subr.bf16.mxu1 %v462_v0  ;;  %v438_v10 = vld [vmem:[%s600_s2 + $0x60] sm:$0xff]   ;;  %v441_v13 = vld [vmem:[%s600_s2 + $0x58] sm:$0xff]   ;;  %v444_v16 = vld [vmem:[%s600_s2 + $0x50] sm:$0xff]  }
   0x5   :  { %407 = vmatprep.subr.bf16.mxu0 %v432_v4  ;;  %v439_v11 = vld [vmem:[%s600_s2 + $0xa0] sm:$0xff]   ;;  %v442_v14 = vld [vmem:[%s600_s2 + $0x98] sm:$0xff]   ;;  %v445_v17 = vld [vmem:[%s600_s2 + $0x90] sm:$0xff]  }
   0x6   :  { %v440_v12 = vld [vmem:[%s600_s2 + $0x20] sm:$0xff]   ;;  %v443_v15 = vld [vmem:[%s600_s2 + $0x18] sm:$0xff]   ;;  %v446_v18 = vld [vmem:[%s600_s2 + $0x10] sm:$0xff]  }
   0x7   :  { %314 = vmatpush1.bf16.msra.mxu1 %v433_v5  ;;  %v447_v19 = vld [vmem:[%s600_s2 + $0x48] sm:$0xff]   ;;  %v450_v22 = vld [vmem:[%s600_s2 + $0x40] sm:$0xff]   ;;  %v456_v29 = vld [vmem:[%s600_s2 + $0xd0] sm:$0xff]  }
   0x8   :  { %408 = vmatpush3.bf16.msra.mxu0 %v434_v6  ;;  %315 = vmatprep.subr.bf16.mxu1 %v462_v0  ;;  %v448_v20 = vld [vmem:[%s600_s2 + $0x88] sm:$0xff]   ;;  %v455_v23 = vld [vmem:[%s601_s0 + $0x4] ss:$16 sps:$4 sm:$0xff]   ;;  %v453_v28 = vld [vmem:[%s601_s0] ss:$16 sps:$4 sm:$0xff]  }
   0x9   :  { %409 = vmatprep.subr.bf16.mxu0 %v435_v7  ;;  %v449_v21 = vld [vmem:[%s600_s2 + $0x8] sm:$0xff]   ;;  %v451_v24 = vld [vmem:[%s600_s2 + $0x80] sm:$0xff]   ;;  %302 = vmatprep.mubr.bf16.mxu0 %v455_v23 }
   0xa   :  { %v452_v25 = vld [vmem:[%s600_s2] sm:$0xff]   ;;  %v461_v26 = vld [vmem:[%s601_s0 + $0xc] ss:$16 sps:$4 sm:$0xff]   ;;  %v459_v33 = vld [vmem:[%s601_s0 + $0x8] ss:$16 sps:$4 sm:$0xff]  }
   0xb   :  { %316 = vmatpush1.bf16.msra.mxu1 %v436_v8  ;;  %v73_v27 = vld [vmem:[%s602_s1] sm:$0xff]  ;;  %400 = vmatprep.mubr.msk.bf16.mxu1 %vm266_vm0, %v461_v26  ;;  %v74_v30 = vld [vmem:[%s602_s1 + $0x8] sm:$0xff] }
   0xc   :  { %410 = vmatpush3.bf16.msra.mxu0 %v437_v9  ;;  %317 = vmatprep.subr.bf16.mxu1 %v462_v0  ;;  %v457_v31 = vld [vmem:[%s600_s2 + $0xc8] sm:$0xff]   ;;  %v458_v32 = vld [vmem:[%s600_s2 + $0xc0] sm:$0xff]  }
   0xd   :  { %411 = vmatprep.subr.bf16.mxu0 %v438_v10  ;;  %77 = vperm.xlu0 %428, %v73_v27  }
   0xf   :  { %318 = vmatpush1.bf16.msra.mxu1 %v439_v11 }
  0x10   :  { %412 = vmatpush3.bf16.msra.mxu0 %v440_v12  ;;  %319 = vmatprep.subr.bf16.mxu1 %v462_v0 }
  0x11   :  { %413 = vmatprep.subr.bf16.mxu0 %v441_v13  ;;  %82 = vperm.xlu0 %428, %v74_v30  }
  0x13   :  { %320 = vmatpush1.bf16.msra.mxu1 %v442_v14 }
  0x14   :  { %414 = vmatpush3.bf16.msra.mxu0 %v443_v15  ;;  %321 = vmatprep.subr.bf16.mxu1 %v462_v0 }
  0x15   :  { %415 = vmatprep.subr.bf16.mxu0 %v444_v16 }
  0x17   :  { %322 = vmatpush1.bf16.msra.mxu1 %v445_v17 }
  0x18   :  { %416 = vmatpush3.bf16.msra.mxu0 %v446_v18  ;;  %323 = vmatprep.subr.bf16.mxu1 %v462_v0 }
  0x19   :  { %417 = vmatprep.subr.bf16.mxu0 %v447_v19 }
  0x1b   :  { %324 = vmatpush1.bf16.msra.mxu1 %v448_v20 }
  0x1c   :  { %418 = vmatpush3.bf16.msra.mxu0 %v449_v21  ;;  %325 = vmatprep.subr.bf16.mxu1 %v462_v0 }
  0x1d   :  { %419 = vmatprep.subr.bf16.mxu0 %v450_v22 }
  0x1f   :  { %326 = vmatpush1.bf16.msra.mxu1 %v451_v24 }
  0x20   :  { %420 = vmatpush3.bf16.msra.mxu0 %v452_v25  ;;  %337 = vmatprep.subr.bf16.mxu1 %v462_v0 }
  0x23   :  { %303 = vmatmul.mubr.bf16.vlgmr.msra.gmra.mxu0 %v453_v28  ;;  %338 = vmatpush2.bf16.msra.mxu1 %v456_v29 }
  0x24   :  { %339 = vmatprep.subr.bf16.mxu1 %v462_v0 }
  0x27   :  { %340 = vmatpush2.bf16.msra.mxu1 %v457_v31 }
  0x28   :  { %341 = vmatprep.subr.bf16.mxu1 %v462_v0 }
  0x2b   :  { %342 = vmatpush2.bf16.msra.mxu1 %v458_v32 }
  0x2e   :  { %344 = vmatmul.mubr.bf16.vlgmr.msra.gmra.mxu1 %v459_v33 }
  0x88   :  { %v78_v37 = vpop.permute.xlu0 %77 }
  0x8c   :  { %v83_v42 = vpop.permute.xlu0 %82 }
  0xe3   :  { %v421_v34 = vpop.f32.mrf.mxu0 }
  0xe5   :  { %v422_v35 = vpop.f32.mrf.mxu0 }
  0xe6   :  { %v423_v38 = vadd.f32 %v422_v35, %v421_v34 }
  0xe7   :  { %v424_v36 = vpop.f32.mrf.mxu0 }
  0xe8   :  { %v305_v40 = vadd.f32 %v423_v38, %v78_v37 }
  0xe9   :  { %v425_v39 = vpop.f32.mrf.mxu0 }
  0xea   :  { %v426_v41 = vadd.f32 %v425_v39, %v424_v36 }
  0xec   :  { %v308_v46 = vadd.f32 %v426_v41, %v83_v42 }
  0xee   :  { %v345_v43 = vpop.f32.mrf.mxu1 }
  0xef   :  { %v346_v44 = vadd.f32 %v345_v43, %v305_v40 }
  0xf0   :  { %v347_v45 = vpop.f32.mrf.mxu1 }
  0xf1   :  { %v352_v47 = vmax.f32 %v346_v44, 0.0 }
  0xf2   :  { %v348_v48 = vpop.f32.mrf.mxu1 }
  0xf3   :  { %v403_v49 = vpack.c.bf16 %v352_v47, %v352_v47  ;;  %v349_v50 = vadd.f32 %v348_v48, %v308_v46 }
  0xf4   :  { %v350_v51 = vpop.f32.mrf.mxu1 }
  0xf5   :  { %363 = vst.msk [vmem:[%s603_s3] sm:$0xf] %vm362_vm1, %v403_v49  ;;  %v353_v52 = vmax.f32 %v349_v50, 0.0 }
  0xf7   :  { %v404_v53 = vpack.c.bf16 %v353_v52, %v353_v52 }
  0xf9   :  { %364 = vst.msk [vmem:[%s603_s3 + $0x4] sm:$0xf] %vm362_vm1, %v404_v53 }

// kernel: mcahg_forward.10
= control target key start
LH: loop header
LB: loop body
LE: loop exit
PB: predicated region body
PF: predicated region fallthrough
CT: control target
= control target key end

     0   :  { %v417_v0 = vmov 0   ;;  %vm203_vm0 = vcmask 523264   ;;  %vm313_vm1 = vcmask 519168   ;;  %s584_s2 = inlined_call_operand.vmem [shape: bf16[192,64], index: 2, kind: input, shape index: {}]   ;;  %s585_s0 = inlined_call_operand.vmem [shape: bf16[64,192], index: 0, kind: input, shape index: {}]   ;;  %s586_s1 = inlined_call_operand.vmem [shape: f32[64,1], index: 1, kind: input, shape index: {}]   ;;  %s587_s3 = inlined_call_operand.vmem [shape: bf16[64,64], index: 3, kind: output, shape index: {}]  }
   0x1   :  { %216 = vmatprep.subr.bf16.mxu0 %v417_v0  ;;  %366 = vmatprep.subr.bf16.mxu1 %v417_v0  ;;  %v393_v1 = vld [vmem:[%s584_s2 + $0x38] sm:$0xff]   ;;  %v394_v2 = vld [vmem:[%s584_s2 + $0x30] sm:$0xff]   ;;  %v395_v3 = vld [vmem:[%s584_s2 + $0x28] sm:$0xff]  }
   0x2   :  { %392 = vset.pattern.permute.xlu1 %v417_v0  ;;  %391 = vset.pattern.permute.xlu0 %v417_v0  ;;  %v396_v4 = vld [vmem:[%s584_s2 + $0x20] sm:$0xff]   ;;  %v397_v6 = vld [vmem:[%s584_s2 + $0x18] sm:$0xff]   ;;  %v49_v8 = vld [vmem:[%s586_s1 + $0x10] sm:$0xff] }
   0x3   :  { %217 = vmatpush1.bf16.msra.mxu0 %v393_v1  ;;  %378 = vmatpush1.bf16.msra.mxu1 %v393_v1  ;;  %v407_v5 = vld [vmem:[%s585_s0 + $0x4] ss:$8 sps:$4 sm:$0xff]   ;;  %v398_v10 = vld [vmem:[%s584_s2 + $0x10] sm:$0xff]   ;;  %v50_v11 = vld [vmem:[%s586_s1 + $0x18] sm:$0xff] }
   0x4   :  { %218 = vmatprep.subr.bf16.mxu0 %v417_v0  ;;  %367 = vmatprep.subr.bf16.mxu1 %v417_v0  ;;  %v410_v7 = vld [vmem:[%s585_s0 + $0x24] ss:$8 sps:$4 sm:$0xff]   ;;  %v54_v17 = vld [vmem:[%s586_s1 + $0x38] sm:$0xff]  ;;  %v53_v18 = vld [vmem:[%s586_s1 + $0x30] sm:$0xff] }
   0x5   :  { %346 = vmatprep.mubr.msk.bf16.mxu0 %vm203_vm0, %v407_v5  ;;  %348 = vmatprep.mubr.msk.bf16.mxu1 %vm203_vm0, %v410_v7  ;;  %v47_v9 = vld [vmem:[%s586_s1] sm:$0xff]  ;;  %v48_v12 = vld [vmem:[%s586_s1 + $0x8] sm:$0xff]  ;;  %v401_v19 = vld [vmem:[%s584_s2 + $0x58] sm:$0xff]  }
   0x6   :  { %67 = vperm.xlu1 %392, %v49_v8   ;;  %57 = vperm.xlu0 %391, %v47_v9   ;;  %v399_v13 = vld [vmem:[%s584_s2 + $0x8] sm:$0xff]   ;;  %v51_v15 = vld [vmem:[%s586_s1 + $0x20] sm:$0xff]  ;;  %v402_v20 = vld [vmem:[%s584_s2 + $0x50] sm:$0xff]  }
   0x7   :  { %219 = vmatpush1.bf16.msra.mxu0 %v394_v2  ;;  %379 = vmatpush1.bf16.msra.mxu1 %v394_v2  ;;  %v52_v14 = vld [vmem:[%s586_s1 + $0x28] sm:$0xff]  ;;  %v400_v16 = vld [vmem:[%s584_s2] sm:$0xff]   ;;  %v411_v25 = vld [vmem:[%s585_s0 + $0x14] ss:$8 sps:$4 sm:$0xff]  }
   0x8   :  { %220 = vmatprep.subr.bf16.mxu0 %v417_v0  ;;  %368 = vmatprep.subr.bf16.mxu1 %v417_v0  ;;  %v403_v21 = vld [vmem:[%s584_s2 + $0x48] sm:$0xff]   ;;  %v404_v22 = vld [vmem:[%s584_s2 + $0x40] sm:$0xff]   ;;  %v413_v26 = vld [vmem:[%s585_s0 + $0x34] ss:$8 sps:$4 sm:$0xff]  }
   0x9   :  { %v405_v23 = vld [vmem:[%s585_s0] ss:$8 sps:$4 sm:$0xff]   ;;  %v415_v27 = vld [vmem:[%s585_s0 + $0x10] ss:$8 sps:$4 sm:$0xff]  }
   0xa   :  { %72 = vperm.xlu1 %392, %v50_v11   ;;  %62 = vperm.xlu0 %391, %v48_v12   ;;  %v408_v24 = vld [vmem:[%s585_s0 + $0x20] ss:$8 sps:$4 sm:$0xff]   ;;  %v416_v28 = vld [vmem:[%s585_s0 + $0x30] ss:$8 sps:$4 sm:$0xff]  }
   0xb   :  { %221 = vmatpush1.bf16.msra.mxu0 %v395_v3  ;;  %380 = vmatpush1.bf16.msra.mxu1 %v395_v3 }
   0xc   :  { %222 = vmatprep.subr.bf16.mxu0 %v417_v0  ;;  %369 = vmatprep.subr.bf16.mxu1 %v417_v0 }
   0xe   :  { %82 = vperm.xlu1 %392, %v52_v14   ;;  %77 = vperm.xlu0 %391, %v51_v15  }
   0xf   :  { %223 = vmatpush1.bf16.msra.mxu0 %v396_v4  ;;  %381 = vmatpush1.bf16.msra.mxu1 %v396_v4 }
  0x10   :  { %224 = vmatprep.subr.bf16.mxu0 %v417_v0  ;;  %370 = vmatprep.subr.bf16.mxu1 %v417_v0 }
  0x12   :  { %92 = vperm.xlu1 %392, %v54_v17   ;;  %87 = vperm.xlu0 %391, %v53_v18  }
  0x13   :  { %225 = vmatpush1.bf16.msra.mxu0 %v397_v6  ;;  %382 = vmatpush1.bf16.msra.mxu1 %v397_v6 }
  0x14   :  { %226 = vmatprep.subr.bf16.mxu0 %v417_v0  ;;  %371 = vmatprep.subr.bf16.mxu1 %v417_v0 }
  0x17   :  { %227 = vmatpush1.bf16.msra.mxu0 %v398_v10  ;;  %383 = vmatpush1.bf16.msra.mxu1 %v398_v10 }
  0x18   :  { %228 = vmatprep.subr.bf16.mxu0 %v417_v0  ;;  %372 = vmatprep.subr.bf16.mxu1 %v417_v0 }
  0x1b   :  { %229 = vmatpush1.bf16.msra.mxu0 %v399_v13  ;;  %384 = vmatpush1.bf16.msra.mxu1 %v399_v13 }
  0x1c   :  { %230 = vmatprep.subr.bf16.mxu0 %v417_v0  ;;  %373 = vmatprep.subr.bf16.mxu1 %v417_v0 }
  0x1f   :  { %231 = vmatpush1.bf16.msra.mxu0 %v400_v16  ;;  %385 = vmatpush1.bf16.msra.mxu1 %v400_v16 }
  0x20   :  { %240 = vmatprep.subr.bf16.mxu0 %v417_v0  ;;  %374 = vmatprep.subr.bf16.mxu1 %v417_v0 }
  0x23   :  { %241 = vmatpush2.bf16.msra.mxu0 %v401_v19  ;;  %386 = vmatpush2.bf16.msra.mxu1 %v401_v19 }
  0x24   :  { %242 = vmatprep.subr.bf16.mxu0 %v417_v0  ;;  %375 = vmatprep.subr.bf16.mxu1 %v417_v0 }
  0x27   :  { %243 = vmatpush2.bf16.msra.mxu0 %v402_v20  ;;  %387 = vmatpush2.bf16.msra.mxu1 %v402_v20 }
  0x28   :  { %244 = vmatprep.subr.bf16.mxu0 %v417_v0  ;;  %376 = vmatprep.subr.bf16.mxu1 %v417_v0 }
  0x2b   :  { %245 = vmatpush2.bf16.msra.mxu0 %v403_v21  ;;  %388 = vmatpush2.bf16.msra.mxu1 %v403_v21 }
  0x2c   :  { %246 = vmatprep.subr.bf16.mxu0 %v417_v0  ;;  %377 = vmatprep.subr.bf16.mxu1 %v417_v0 }
  0x2f   :  { %247 = vmatpush2.bf16.msra.mxu0 %v404_v22  ;;  %389 = vmatpush2.bf16.msra.mxu1 %v404_v22 }
  0x32   :  { %249 = vmatmul.mubr.bf16.vlgmr.msra.gmra.mxu0 %v405_v23  ;;  %265 = vmatmul.mubr.bf16.vlgmr.msra.gmra.mxu1 %v408_v24 }
  0x33   :  { %347 = vmatprep.mubr.msk.bf16.mxu0 %vm203_vm0, %v411_v25  ;;  %349 = vmatprep.mubr.msk.bf16.mxu1 %vm203_vm0, %v413_v26 }
  0x3a   :  { %257 = vmatmul.mubr.bf16.gmra.mxu0 %v415_v27  ;;  %273 = vmatmul.mubr.bf16.gmra.mxu1 %v416_v28 }
  0x81   :  { %v58_v29 = vpop.permute.xlu0 %57  ;;  %v68_v30 = vpop.permute.xlu1 %67 }
  0x85   :  { %v63_v31 = vpop.permute.xlu0 %62  ;;  %v73_v32 = vpop.permute.xlu1 %72 }
  0x89   :  { %v78_v33 = vpop.permute.xlu0 %77  ;;  %v83_v40 = vpop.permute.xlu1 %82 }
  0x8d   :  { %v88_v49 = vpop.permute.xlu0 %87  ;;  %v93_v58 = vpop.permute.xlu1 %92 }
  0xf2   :  { %v250_v34 = vpop.f32.mrf.mxu0  ;;  %v266_v35 = vpop.f32.mrf.mxu1 }
  0xf3   :  { %v251_v36 = vadd.f32 %v250_v34, %v58_v29  ;;  %v267_v37 = vadd.f32 %v266_v35, %v78_v33 }
  0xf4   :  { %v252_v38 = vpop.f32.mrf.mxu0  ;;  %v268_v39 = vpop.f32.mrf.mxu1 }
  0xf5   :  { %v358_v41 = vpack.c.bf16 %v251_v36, %v251_v36  ;;  %v362_v42 = vpack.c.bf16 %v267_v37, %v267_v37 }
  0xf6   :  { %v253_v43 = vpop.f32.mrf.mxu0  ;;  %v269_v44 = vpop.f32.mrf.mxu1 }
  0xf7   :  { %314 = vst.msk [vmem:[%s587_s3] sm:$0xf] %vm313_vm1, %v358_v41  ;;  %318 = vst.msk [vmem:[%s587_s3 + $0x10] sm:$0xf] %vm313_vm1, %v362_v42  ;;  %v254_v45 = vadd.f32 %v253_v43, %v63_v31  ;;  %v270_v46 = vadd.f32 %v269_v44, %v83_v40 }
  0xf8   :  { %v255_v47 = vpop.f32.mrf.mxu0  ;;  %v271_v48 = vpop.f32.mrf.mxu1 }
  0xf9   :  { %v359_v50 = vpack.c.bf16 %v254_v45, %v254_v45  ;;  %v363_v51 = vpack.c.bf16 %v270_v46, %v270_v46 }
  0xfa   :  { %v258_v52 = vpop.f32.mrf.mxu0  ;;  %v274_v53 = vpop.f32.mrf.mxu1 }
  0xfb   :  { %315 = vst.msk [vmem:[%s587_s3 + $0x4] sm:$0xf] %vm313_vm1, %v359_v50  ;;  %319 = vst.msk [vmem:[%s587_s3 + $0x14] sm:$0xf] %vm313_vm1, %v363_v51  ;;  %v259_v54 = vadd.f32 %v258_v52, %v68_v30  ;;  %v275_v55 = vadd.f32 %v274_v53, %v88_v49 }
  0xfc   :  { %v260_v56 = vpop.f32.mrf.mxu0  ;;  %v276_v57 = vpop.f32.mrf.mxu1 }
  0xfd   :  { %v360_v59 = vpack.c.bf16 %v259_v54, %v259_v54  ;;  %v364_v60 = vpack.c.bf16 %v275_v55, %v275_v55 }
  0xfe   :  { %v261_v61 = vpop.f32.mrf.mxu0  ;;  %v277_v62 = vpop.f32.mrf.mxu1 }
  0xff   :  { %316 = vst.msk [vmem:[%s587_s3 + $0x8] sm:$0xf] %vm313_vm1, %v360_v59  ;;  %320 = vst.msk [vmem:[%s587_s3 + $0x18] sm:$0xf] %vm313_vm1, %v364_v60  ;;  %v262_v63 = vadd.f32 %v261_v61, %v73_v32  ;;  %v278_v0 = vadd.f32 %v277_v62, %v93_v58 }
 0x100   :  { %v263_v1 = vpop.f32.mrf.mxu0  ;;  %v279_v2 = vpop.f32.mrf.mxu1 }
 0x101   :  { %v361_v3 = vpack.c.bf16 %v262_v63, %v262_v63  ;;  %v365_v4 = vpack.c.bf16 %v278_v0, %v278_v0 }
 0x103   :  { %317 = vst.msk [vmem:[%s587_s3 + $0xc] sm:$0xf] %vm313_vm1, %v361_v3  ;;  %321 = vst.msk [vmem:[%s587_s3 + $0x1c] sm:$0xf] %vm313_vm1, %v365_v4 }

// kernel: mcahg_forward.11
= control target key start
LH: loop header
LB: loop body
LE: loop exit
PB: predicated region body
PF: predicated region fallthrough
CT: control target
= control target key end

     0   :  { %s702_s12 = smov 0   ;;  %s704_s13 = smov 0   ;;  %s798_s0 = inlined_call_operand.vmem [shape: bf16[32,96], index: 0, kind: input, shape index: {}]   ;;  %s799_s1 = inlined_call_operand.vmem [shape: f32[32,1], index: 1, kind: input, shape index: {}]   ;;  %s800_s2 = inlined_call_operand.vmem [shape: bf16[96,512], index: 2, kind: input, shape index: {}]   ;;  %s801_s3 = inlined_call_operand.vmem [shape: bf16[32,512], index: 3, kind: output, shape index: {}]  }
   0x1   :  { %s706_s14 = smov 0  }
   0x2 LB: > { %s557_s15 = sadd.s32 4294967295, %s679_s14   ;;  %s719_s16 = sadd.s32 1, %s679_s14   ;;  %s679_s14 = sphi %s706_s14, %s805_s14   ;;  %s675_s13 = sphi %s704_s13, %s804_s13   ;;  %s671_s12 = sphi %s702_s12, %s803_s12  }
   0x3   : > { %s59_s17 = ssub.s32 %s679_s14, %s719_s16  ;;  %s62_s18 = sadd.s32 1, %s675_s13 }
   0x4   : > { %p60_p0 = scmp.eq.s32.totalorder %s59_s17, 0  ;;  %p69_p1 = scmp.ne.s32.totalorder %s675_s13, %s671_s12 }
   0x5   : > { %p70_p2 = scmp.eq.s32.totalorder %s679_s14, 0  ;;  %p99_p3 = scmp.eq.s32.totalorder %s557_s15, 1 }
   0x6   : > { %s730_s19 = scalar_select %p60_p0, %s675_s13, %s62_s18  }
   0x7   : > { %p71_p4 = por %p70_p2, %p69_p1  ;;  %p732_p5 = por %p99_p3, %p69_p1 }
   0x8   : > { %p560_p6 = scmp.ge.s32.totalorder %s679_s14, 2 }
   0xa   : > { %127 = sbr.rel (%p560_p6) target bundleno = 25 (0x19), region = 24 }
   0xf   : > { %130 = sbr.rel (!%p71_p4) target bundleno = 25 (0x19), region = 28  ;;  %s132_s21 = sand.u32 (%p71_p4), 1, %s675_s13  }
  0x10   : > { %s590_s22 = sshll.u32 (%p71_p4), %s679_s14, 3  ;;  %s608_s23 = smul.u32 (%p71_p4), 96, %s132_s21 }
  0x11   : > { %s137_s26 = scalar_lea.vmem (%p71_p4), %s800_s2, %s590_s22 }
  0x12   : > { %v188_v0 = vld [vmem:[%s137_s26] sm:$0xff] (%p71_p4)  ;;  %v190_v1 = vld [vmem:[%s137_s26 + $0x10] sm:$0xff] (%p71_p4)  ;;  %s134_s27 = scalar_lea.vmem (%p71_p4), [#allocation2], %s608_s23 }
  0x13   : > { %v192_v2 = vld [vmem:[%s137_s26 + $0x20] sm:$0xff] (%p71_p4)  ;;  %v194_v3 = vld [vmem:[%s137_s26 + $0x30] sm:$0xff] (%p71_p4)  ;;  %189 = vst [vmem:[%s134_s27] sm:$0xff] (%p71_p4), %v188_v0  ;;  %191 = vst [vmem:[%s134_s27 + $0x8] sm:$0xff] (%p71_p4), %v190_v1 }
  0x14   : > { %v196_v4 = vld [vmem:[%s137_s26 + $0x40] sm:$0xff]  ;;  %v198_v5 = vld [vmem:[%s137_s26 + $0x50] sm:$0xff]  ;;  %193 = vst [vmem:[%s134_s27 + $0x10] sm:$0xff] %v192_v2  ;;  %195 = vst [vmem:[%s134_s27 + $0x18] sm:$0xff] %v194_v3 }
  0x15   : > { %197 = vst [vmem:[%s134_s27 + $0x20] sm:$0xff] %v196_v4  ;;  %199 = vst [vmem:[%s134_s27 + $0x28] sm:$0xff] %v198_v5  ;;  %v200_v6 = vld [vmem:[%s137_s26 + $0x60] sm:$0xff]  ;;  %v202_v7 = vld [vmem:[%s137_s26 + $0x70] sm:$0xff] }
  0x16   : > { %v204_v8 = vld [vmem:[%s137_s26 + $0x80] sm:$0xff]  ;;  %201 = vst [vmem:[%s134_s27 + $0x30] sm:$0xff] %v200_v6  ;;  %203 = vst [vmem:[%s134_s27 + $0x38] sm:$0xff] %v202_v7  ;;  %v206_v9 = vld [vmem:[%s137_s26 + $0x90] sm:$0xff] }
  0x17   : > { %205 = vst [vmem:[%s134_s27 + $0x40] sm:$0xff] %v204_v8  ;;  %v208_v10 = vld [vmem:[%s137_s26 + $0xa0] sm:$0xff]  ;;  %v210_v11 = vld [vmem:[%s137_s26 + $0xb0] sm:$0xff]  ;;  %207 = vst [vmem:[%s134_s27 + $0x48] sm:$0xff] %v206_v9 }
  0x18   : > { %209 = vst [vmem:[%s134_s27 + $0x50] sm:$0xff] %v208_v10  ;;  %211 = vst [vmem:[%s134_s27 + $0x58] sm:$0xff] %v210_v11 }
  0x19 PF: > { %p563_p7 = scmp.ge.s32.totalorder %s679_s14, 1  ;;  %p216_p8 = scmp.lt.s32.totalorder %s679_s14, 3 }
  0x1b   : > { %p217_p9 = pnand %p563_p7, %p216_p8 }
  0x1c   : > { %s223_s28 = sand.u32 (!%p217_p9), 1, %s671_s12  }
  0x1d   : > { %220 = sbr.rel (%p217_p9) target bundleno = 274 (0x112), region = 66  ;;  %s564_s23 = sshll.u32 (!%p217_p9), %s223_s28, 5 }
  0x1e   : > { %s609_s29 = smul.u32 (!%p217_p9), 96, %s223_s28  ;;  %s244_s24 = scalar_lea.vmem (!%p217_p9), [#allocation3], %s564_s23 }
  0x20   : > { %s753_s7 = scalar_lea.vmem (!%p217_p9), [#allocation2], %s609_s29 }
  0x22   : > { %v681_v12 = vmov 0   ;;  %v266_v13 = vld [vmem:[%s799_s1 + $0x10] sm:$0xff]  ;;  %v264_v14 = vld [vmem:[%s799_s1] sm:$0xff]  ;;  %v267_v16 = vld [vmem:[%s799_s1 + $0x18] sm:$0xff]  ;;  %vm358_vm0 = vcmask 785408   ;;  %s595_s12 = sshll.u32 (%p732_p5), %s557_s15, 3 }
  0x23   : > { %397 = vmatprep.mubr.bf16.mxu0 %v681_v12  ;;  %407 = vmatprep.mubr.bf16.mxu1 %v681_v12  ;;  %v637_v15 = vld [vmem:[%s753_s7 + $0x54] ss:$8 sps:$4 sm:$0xff]   ;;  %v639_v17 = vld [vmem:[%s753_s7 + $0x50] ss:$8 sps:$4 sm:$0xff]   ;;  %v640_v18 = vld [vmem:[%s753_s7 + $0x44] ss:$8 sps:$4 sm:$0xff]   ;;  %s455_s27 = scalar_lea.vmem (%p732_p5), %s801_s3, %s595_s12 }
  0x24   : > { %636 = vset.pattern.permute.xlu1 %v681_v12  ;;  %635 = vset.pattern.permute.xlu0 %v681_v12  ;;  %v265_v19 = vld [vmem:[%s799_s1 + $0x8] sm:$0xff]  ;;  %v643_v21 = vld [vmem:[%s753_s7 + $0x34] ss:$8 sps:$4 sm:$0xff]   ;;  %v645_v22 = vld [vmem:[%s753_s7 + $0x30] ss:$8 sps:$4 sm:$0xff]  }
  0x25   : > { %280 = vperm.xlu1 %636, %v266_v13   ;;  %270 = vperm.xlu0 %635, %v264_v14   ;;  %v642_v20 = vld [vmem:[%s753_s7 + $0x40] ss:$8 sps:$4 sm:$0xff]   ;;  %v646_v23 = vld [vmem:[%s753_s7 + $0x24] ss:$8 sps:$4 sm:$0xff]   ;;  %v649_v25 = vld [vmem:[%s753_s7 + $0x14] ss:$8 sps:$4 sm:$0xff]  }
  0x26   : > { %369 = vmatprep.subr.bf16.mxu0 %v637_v15  ;;  %596 = vmatprep.subr.bf16.mxu1 %v637_v15  ;;  %v648_v24 = vld [vmem:[%s753_s7 + $0x20] ss:$8 sps:$4 sm:$0xff]   ;;  %v651_v26 = vld [vmem:[%s753_s7 + $0x10] ss:$8 sps:$4 sm:$0xff]   ;;  %v652_v27 = vld [vmem:[%s753_s7 + $0x4] ss:$8 sps:$4 sm:$0xff]  }
  0x27   : > { %370 = vmatpush1.bf16.msra.mxu0 %v639_v17  ;;  %602 = vmatpush1.bf16.msra.mxu1 %v639_v17  ;;  %v654_v28 = vld [vmem:[%s753_s7] ss:$8 sps:$4 sm:$0xff]  }
  0x28   : > { %371 = vmatprep.subr.bf16.mxu0 %v640_v18  ;;  %597 = vmatprep.subr.bf16.mxu1 %v640_v18  ;;  %v655_v29 = vld [vmem:[%s798_s0] sm:$0xff]   ;;  %v656_v30 = vld [vmem:[%s798_s0 + $0x8] sm:$0xff]  }
  0x29   : > { %285 = vperm.xlu1 %636, %v267_v16   ;;  %275 = vperm.xlu0 %635, %v265_v19  }
  0x2b   : > { %372 = vmatpush1.bf16.msra.mxu0 %v642_v20  ;;  %603 = vmatpush1.bf16.msra.mxu1 %v642_v20 }
  0x2c   : > { %373 = vmatprep.subr.bf16.mxu0 %v643_v21  ;;  %598 = vmatprep.subr.bf16.mxu1 %v643_v21 }
  0x2f   : > { %374 = vmatpush1.bf16.msra.mxu0 %v645_v22  ;;  %604 = vmatpush1.bf16.msra.mxu1 %v645_v22 }
  0x30   : > { %375 = vmatprep.subr.bf16.mxu0 %v646_v23  ;;  %599 = vmatprep.subr.bf16.mxu1 %v646_v23 }
  0x33   : > { %376 = vmatpush1.bf16.msra.mxu0 %v648_v24  ;;  %605 = vmatpush1.bf16.msra.mxu1 %v648_v24 }
  0x34   : > { %377 = vmatprep.subr.bf16.mxu0 %v649_v25  ;;  %600 = vmatprep.subr.bf16.mxu1 %v649_v25 }
  0x37   : > { %378 = vmatpush1.bf16.msra.mxu0 %v651_v26  ;;  %606 = vmatpush1.bf16.msra.mxu1 %v651_v26 }
  0x38   : > { %379 = vmatprep.subr.bf16.mxu0 %v652_v27  ;;  %601 = vmatprep.subr.bf16.mxu1 %v652_v27 }
  0x3b   : > { %380 = vmatpush1.bf16.msra.mxu0 %v654_v28  ;;  %607 = vmatpush1.bf16.msra.mxu1 %v654_v28 }
  0x3e   : > { %579 = vmatmul.mubr.msk.bf16.vlgmr.msra.gmra.mxu0 %vm358_vm0, %v655_v29  ;;  %580 = vmatmul.mubr.msk.bf16.vlgmr.msra.gmra.mxu1 %vm358_vm0, %v656_v30 }
  0xa0   : > { %v281_v31 = vpop.permute.xlu1 %280  ;;  %v271_v32 = vpop.permute.xlu0 %270 }
  0xa4   : > { %v286_v43 = vpop.permute.xlu1 %285  ;;  %v276_v44 = vpop.permute.xlu0 %275 }
  0xfe   : > { %v399_v33 = vpop.f32.mrf.mxu0  ;;  %v409_v34 = vpop.f32.mrf.mxu1 }
  0xff   : > { %v400_v37 = vadd.f32 %v399_v33, %v271_v32  ;;  %v410_v38 = vadd.f32 %v409_v34, %v281_v31 }
 0x100   : > { %v401_v35 = vpop.f32.mrf.mxu0  ;;  %v411_v36 = vpop.f32.mrf.mxu1 }
 0x101   : > { %v402_v39 = vadd.f32 %v401_v35, %v271_v32  ;;  %v412_v40 = vadd.f32 %v411_v36, %v281_v31 }
 0x102   : > { %v403_v41 = vpop.f32.mrf.mxu0  ;;  %v413_v42 = vpop.f32.mrf.mxu1 }
 0x103   : > { %v591_v45 = vpack.c.bf16 %v402_v39, %v400_v37  ;;  %v593_v46 = vpack.c.bf16 %v412_v40, %v410_v38  ;;  %v404_v49 = vadd.f32 %v403_v41, %v276_v44  ;;  %v414_v50 = vadd.f32 %v413_v42, %v286_v43 }
 0x104   : > { %v405_v47 = vpop.f32.mrf.mxu0  ;;  %v415_v48 = vpop.f32.mrf.mxu1 }
 0x105   : > { %442 = vst [vmem:[%s244_s24] sm:$0xff] %v591_v45  ;;  %444 = vst [vmem:[%s244_s24 + $0x10] sm:$0xff] %v593_v46  ;;  %v406_v51 = vadd.f32 %v405_v47, %v276_v44  ;;  %v416_v52 = vadd.f32 %v415_v48, %v286_v43  ;;  %452 = sbr.rel (!%p732_p5) target bundleno = 274 (0x112), region = 74 }
 0x107   : > { %v592_v53 = vpack.c.bf16 %v406_v51, %v404_v49  ;;  %v594_v54 = vpack.c.bf16 %v416_v52, %v414_v50 }
 0x109   : > { %443 = vst [vmem:[%s244_s24 + $0x8] sm:$0xff] %v592_v53  ;;  %445 = vst [vmem:[%s244_s24 + $0x18] sm:$0xff] %v594_v54 }
 0x10c   : > { %v490_v55 = vld [vmem:[%s244_s24] sm:$0xff]  ;;  %v494_v57 = vld [vmem:[%s244_s24 + $0x10] sm:$0xff] }
 0x10d   : > { %491 = vst [vmem:[%s455_s27] sm:$0xff] %v490_v55  ;;  %495 = vst [vmem:[%s455_s27 + $0x20] sm:$0xff] %v494_v57 }
 0x110   : > { %v492_v56 = vld [vmem:[%s244_s24 + $0x8] sm:$0xff]  ;;  %v496_v58 = vld [vmem:[%s244_s24 + $0x18] sm:$0xff] }
 0x111   : > { %493 = vst [vmem:[%s455_s27 + $0x10] sm:$0xff] %v492_v56  ;;  %497 = vst [vmem:[%s455_s27 + $0x30] sm:$0xff] %v496_v58 }
 0x112 PF: > { %p10_p10 = scmp.ge.s32.totalorder %s719_s16, 4   ;;  %s803_s12 = smov %s675_s13 }
 0x113   : > { %s804_s13 = smov %s730_s19  ;;  %s805_s14 = smov %s719_s16 }
 0x114   :  { %12 = sbr.rel (!%p10_p10) target bundleno = 2 (0x2), region = 143 }

</bundles_post_ra>
